<compile_context>
chip_gen: v7x
topology: tpu7x:2x2x1
jax: 0.10.0
libtpu: 0.0.40
codegen_flags: <defaults>
</compile_context>

<pallas_src>
import functools

import jax
import jax.numpy as jnp
from jax import lax
from jax.experimental import pallas as pl
from jax.experimental.pallas import tpu as pltpu


# ----------------------------------------------------------------------------
# Hardware-gated defaults
# ----------------------------------------------------------------------------
def _device_kind():
    try:
        return jax.devices()[0].device_kind.lower()
    except Exception:  # pragma: no cover - defensive
        return ""


def _default_softmax_dtype():
    """bf16 exp on v6e/v7x (bf16-capable EUP); f32 on v5e and older/unknown."""
    kind = _device_kind()
    if "v6" in kind or "v7" in kind or "7x" in kind:
        return jnp.bfloat16
    return jnp.float32


def _vmem_limit_bytes():
    """Raise the scoped-VMEM limit, leaving headroom on v7x's smaller VMEM."""
    kind = _device_kind()
    if "v7" in kind or "7x" in kind:
        return 48 * 1024 * 1024      # 64 MiB physical per TC on v7x
    if "v5" in kind or "v6" in kind:
        return 64 * 1024 * 1024      # 128 MiB physical on v5e / v6e
    return None                      # unknown chip: keep compiler default


def _pick_tile(n, preferred=128):
    # TODO(synk): at real ConvNeXt sizes pick larger per-generation tiles
    #             (v5e/v6e: tq~512-1024, tk~1024; v7x: tq~256-512, tk~512-1024)
    #             and pad/mask when n is not a multiple of the tile.
    if n > preferred and n % preferred == 0:
        return preferred
    return n


# ----------------------------------------------------------------------------
# Fused projection + flash multi-head attention + output projection kernel
#
# grid = (batch, q_tile, head, k_tile); head and k_tile are "arbitrary"
# (reduction-style) axes carried by VMEM scratch accumulators.
# ----------------------------------------------------------------------------
def _flash_mha_kernel(*refs, d_k, d_v, fuse_kv, mm_dtype, softmax_dtype,
                      approx_recip):
    if fuse_kv:
        (xq_ref, xkv_ref,
         wq_ref, bq_ref, wkv_ref, bkv_ref, wo_ref, bo_ref,
         o_ref,
         q_scr, m_scr, l_scr, acc_scr, y_scr) = refs
    else:
        (xq_ref, xk_ref, xv_ref,
         wq_ref, bq_ref, wk_ref, bk_ref, wv_ref, bv_ref, wo_ref, bo_ref,
         o_ref,
         q_scr, m_scr, l_scr, acc_scr, y_scr) = refs

    f32 = jnp.float32
    hi = pl.program_id(2)
    ki = pl.program_id(3)
    last_h = pl.num_programs(2) - 1
    last_k = pl.num_programs(3) - 1

    @pl.when((hi == 0) & (ki == 0))
    def _():
        # Output-projection accumulator over heads (per batch / q-tile).
        y_scr[...] = jnp.zeros_like(y_scr)

    @pl.when(ki == 0)
    def _():
        # Per-(q-tile, head) Q projection.  1/sqrt(d_k) is folded into Wq/bq,
        # so no per-element scale pass is needed in the kernel.
        q = jnp.dot(xq_ref[0], wq_ref[0], preferred_element_type=f32) + bq_ref[0]
        q_scr[...] = q.astype(mm_dtype)
        m_scr[...] = jnp.full(m_scr.shape, -jnp.inf, dtype=m_scr.dtype)
        l_scr[...] = jnp.zeros_like(l_scr)
        acc_scr[...] = jnp.zeros_like(acc_scr)

    # K / V projections for this (head, k-tile).  Every projection column is
    # computed exactly once across the whole grid.  When keys is values (the
    # ConvNeXt self-attention case) K|V share one fused, wider matmul.
    if fuse_kv:
        kv = jnp.dot(xkv_ref[0], wkv_ref[0], preferred_element_type=f32) + bkv_ref[0]
        kv = kv.astype(mm_dtype)
        k_mm = kv[:, :d_k]
        v_mm = kv[:, d_k:]
    else:
        k_mm = (jnp.dot(xk_ref[0], wk_ref[0], preferred_element_type=f32)
                + bk_ref[0]).astype(mm_dtype)
        v_mm = (jnp.dot(xv_ref[0], wv_ref[0], preferred_element_type=f32)
                + bv_ref[0]).astype(mm_dtype)

    # Scores: s[i, j] = sum_d q[i, d] * k[j, d]   (transposed-RHS contraction).
    s = lax.dot_general(q_scr[...], k_mm, (((1,), (1,)), ((), ())),
                        preferred_element_type=f32)                 # (tq, tk)

    # Online softmax.  Row max and denominator stay f32; the exp itself runs in
    # softmax_dtype (bf16 on v6e/v7x, f32 on v5e).
    m_prev = m_scr[...]
    m_new = jnp.maximum(m_prev, jnp.max(s, axis=-1, keepdims=True))
    alpha = jnp.exp(m_prev - m_new)                                  # (tq, 1) f32
    p = jnp.exp((s - m_new).astype(softmax_dtype))                   # (tq, tk)
    l_scr[...] = alpha * l_scr[...] + jnp.sum(p, axis=-1, keepdims=True, dtype=f32)
    acc_scr[...] = alpha * acc_scr[...] + jnp.dot(
        p.astype(mm_dtype), v_mm, preferred_element_type=f32)        # (tq, d_v)
    m_scr[...] = m_new
    # TODO(synk): nn.Dropout(p=0.1) on the attention probs is identity at
    #             inference time and is omitted.

    @pl.when(ki == last_k)
    def _():
        # Normalize AFTER the PV matmul: touches tq*d_v elements instead of
        # rescaling the full (tq, tk) probability block.
        if approx_recip:
            inv_l = pl.reciprocal(l_scr[...], approx=True)
        else:
            inv_l = 1.0 / l_scr[...]
        oh = acc_scr[...] * inv_l                                    # (tq, d_v)
        # Output projection accumulated head-by-head
        # (== concat(heads) @ Wo, without an in-kernel concatenate).
        y_scr[...] += jnp.dot(oh.astype(mm_dtype), wo_ref[0],
                              preferred_element_type=f32)

    @pl.when((hi == last_h) & (ki == last_k))
    def _():
        # TODO(synk): d_model < 128 makes this a masked (sub-lane-dense) store;
        #             at deployment d_model >= 128 it becomes an unmasked vst.
        o_ref[0] = (y_scr[...] + bo_ref[...]).astype(o_ref.dtype)


# ----------------------------------------------------------------------------
# pallas_call wrapper
# ----------------------------------------------------------------------------
def _pallas_sdpa(xq, xk, xv, prep, *, softmax_dtype, approx_reciprocal, shared_kv):
    b, nq, d_model = xq.shape
    nk = xk.shape[1]
    d_k, d_v, h = prep["d_k"], prep["d_v"], prep["h"]
    mm_dtype = prep["mm_dtype"]
    out_dtype = xq.dtype

    tq = _pick_tile(nq)
    tk = _pick_tile(nk)
    grid = (b, nq // tq, h, nk // tk)

    def cast(a):
        return a if a.dtype == mm_dtype else a.astype(mm_dtype)

    xq_c = cast(xq)
    xk_c = cast(xk)

    xq_spec = pl.BlockSpec((1, tq, d_model), lambda bi, qi, hi, ki: (bi, qi, 0))
    xkv_spec = pl.BlockSpec((1, tk, d_model), lambda bi, qi, hi, ki: (bi, ki, 0))

    def head_spec(*block):
        return pl.BlockSpec((1,) + tuple(block), lambda bi, qi, hi, ki: (hi, 0, 0))

    bo_spec = pl.BlockSpec((1, d_model), lambda bi, qi, hi, ki: (0, 0))

    kernel = functools.partial(
        _flash_mha_kernel,
        d_k=d_k, d_v=d_v, fuse_kv=shared_kv,
        mm_dtype=mm_dtype, softmax_dtype=softmax_dtype,
        approx_recip=approx_reciprocal)

    if shared_kv:
        inputs = (xq_c, xk_c,
                  prep["Wq"], prep["bq"], prep["Wkv"], prep["bkv"],
                  prep["Wo"], prep["bo"])
        in_specs = [
            xq_spec, xkv_spec,
            head_spec(d_model, d_k), head_spec(1, d_k),
            head_spec(d_model, d_k + d_v), head_spec(1, d_k + d_v),
            head_spec(d_v, d_model), bo_spec,
        ]
    else:
        xv_c = cast(xv)
        inputs = (xq_c, xk_c, xv_c,
                  prep["Wq"], prep["bq"], prep["Wk"], prep["bk"],
                  prep["Wv"], prep["bv"], prep["Wo"], prep["bo"])
        in_specs = [
            xq_spec, xkv_spec, xkv_spec,
            head_spec(d_model, d_k), head_spec(1, d_k),
            head_spec(d_model, d_k), head_spec(1, d_k),
            head_spec(d_model, d_v), head_spec(1, d_v),
            head_spec(d_v, d_model), bo_spec,
        ]

    return pl.pallas_call(
        kernel,
        out_shape=jax.ShapeDtypeStruct((b, nq, d_model), out_dtype),
        grid=grid,
        in_specs=in_specs,
        out_specs=pl.BlockSpec((1, tq, d_model), lambda bi, qi, hi, ki: (bi, qi, 0)),
        scratch_shapes=[
            pltpu.VMEM((tq, d_k), mm_dtype),         # projected (pre-scaled) Q
            pltpu.VMEM((tq, 1), jnp.float32),        # running row max
            pltpu.VMEM((tq, 1), jnp.float32),        # running denominator
            pltpu.VMEM((tq, d_v), jnp.float32),      # unnormalized PV accumulator
            pltpu.VMEM((tq, d_model), jnp.float32),  # output-projection accumulator
        ],
        compiler_params=pltpu.CompilerParams(
            dimension_semantics=("parallel", "parallel", "arbitrary", "arbitrary"),
            vmem_limit_bytes=_vmem_limit_bytes(),
        ),
    )(*inputs)


# ----------------------------------------------------------------------------
# Parameters (nn.Linear init from the module: weight ~ Normal(0, 0.001), bias 0)
# Weights stored as (in, out).
# ----------------------------------------------------------------------------
def init_params(key, d_model, d_k, d_v, h):
    kq, kk, kv, ko = jax.random.split(key, 4)
    std = 0.001
    return {
        "Wq": jax.random.normal(kq, (d_model, h * d_k), jnp.float32) * std,
        "bq": jnp.zeros((h * d_k,), jnp.float32),
        "Wk": jax.random.normal(kk, (d_model, h * d_k), jnp.float32) * std,
        "bk": jnp.zeros((h * d_k,), jnp.float32),
        "Wv": jax.random.normal(kv, (d_model, h * d_v), jnp.float32) * std,
        "bv": jnp.zeros((h * d_v,), jnp.float32),
        "Wo": jax.random.normal(ko, (h * d_v, d_model), jnp.float32) * std,
        "bo": jnp.zeros((d_model,), jnp.float32),
    }


def prepare_params(params, d_k, d_v, h, mm_dtype=jnp.bfloat16):
    """One-time weight prep (do NOT repeat per forward call):
      * fold 1/sqrt(d_k) into Wq / bq,
      * split weights per head (leading head axis -> BlockSpec-sliceable),
      * fuse K|V weights for the shared-KV fast path,
      * cast matmul weights to mm_dtype (bf16 default on all generations);
        biases stay f32 (added after the f32-accumulated matmuls).
    """
    d_model = params["Wq"].shape[0]
    scale = 1.0 / float(d_k) ** 0.5
    f32 = jnp.float32
    mm_dtype = jnp.dtype(mm_dtype)

    def split_w(w, d):      # (d_model, h*d) -> (h, d_model, d)
        return jnp.transpose(w.reshape(d_model, h, d), (1, 0, 2))

    def split_b(bvec, d):   # (h*d,) -> (h, 1, d)
        return bvec.reshape(h, 1, d)

    wk = split_w(params["Wk"], d_k).astype(mm_dtype)
    bk = split_b(params["bk"], d_k).astype(f32)
    wv = split_w(params["Wv"], d_v).astype(mm_dtype)
    bv = split_b(params["bv"], d_v).astype(f32)
    return {
        "Wq": (split_w(params["Wq"], d_k) * scale).astype(mm_dtype),
        "bq": (split_b(params["bq"], d_k) * scale).astype(f32),
        "Wk": wk, "bk": bk, "Wv": wv, "bv": bv,
        "Wkv": jnp.concatenate([wk, wv], axis=2),     # (h, d_model, d_k + d_v)
        "bkv": jnp.concatenate([bk, bv], axis=2),     # (h, 1, d_k + d_v)
        "Wo": params["Wo"].reshape(h, d_v, d_model).astype(mm_dtype),
        "bo": params["bo"].reshape(1, d_model).astype(f32),
        "d_k": d_k, "d_v": d_v, "h": h, "d_model": d_model,
        "mm_dtype": mm_dtype,
    }


# ----------------------------------------------------------------------------
# Forward (glue reshapes in plain JAX; the whole hot path is one Pallas kernel)
# ----------------------------------------------------------------------------
def scaled_dot_product_attention(prep, queries, keys, values,
                                 softmax_dtype=None, approx_reciprocal=True):
    """queries/keys/values: (b, c, H, W) NCHW with c == d_model; returns (b, c, H, W).

    softmax_dtype: dtype for the softmax exp (None -> bf16 on v6e/v7x, f32 on v5e).
    approx_reciprocal: use the EUP approximate reciprocal for the softmax
      denominator (set False for strict numerical parity).
    """
    # TODO(synk): optional attention_mask / attention_weights arguments of the
    #             PyTorch forward are None in this path and are not implemented.
    b, c, H, W = queries.shape
    assert c == prep["d_model"]
    if softmax_dtype is None:
        softmax_dtype = _default_softmax_dtype()

    shared_kv = keys is values   # ConvNeXt self-attention / standard shared-KV case

    # torch .view(b, -1, c): raw row-major reshape (NOT a transpose).
    xq = queries.reshape(b, H * W, c)
    xk = keys.reshape(b, keys.shape[2] * keys.shape[3], c)
    xv = xk if shared_kv else values.reshape(b, values.shape[2] * values.shape[3], c)

    out = _pallas_sdpa(xq, xk, xv, prep,
                       softmax_dtype=jnp.dtype(softmax_dtype),
                       approx_reciprocal=approx_reciprocal,
                       shared_kv=shared_kv)            # (b, nq, d_model)

    # torch .view(b, -1, H, W): raw row-major reshape back to NCHW.
    return out.reshape(b, c, H, W)


# ----------------------------------------------------------------------------
# Pure-JAX reference (for correctness checks)
# ----------------------------------------------------------------------------
def reference_forward(params, queries, keys, values, d_k, d_v, h):
    b, c, H, W = queries.shape
    nq = H * W
    nk = keys.shape[2] * keys.shape[3]
    q_in = queries.reshape(b, nq, c)
    k_in = keys.reshape(b, nk, c)
    v_in = values.reshape(b, nk, c)
    q = (q_in @ params["Wq"] + params["bq"]).reshape(b, nq, h, d_k).transpose(0, 2, 1, 3)
    k = (k_in @ params["Wk"] + params["bk"]).reshape(b, nk, h, d_k).transpose(0, 2, 3, 1)
    v = (v_in @ params["Wv"] + params["bv"]).reshape(b, nk, h, d_v).transpose(0, 2, 1, 3)
    att = jnp.einsum("bhqd,bhdk->bhqk", q, k) / jnp.sqrt(jnp.float32(d_k))
    att = jax.nn.softmax(att, axis=-1)
    out = jnp.einsum("bhqk,bhkd->bhqd", att, v)
    out = out.transpose(0, 2, 1, 3).reshape(b, nq, h * d_v)
    out = out @ params["Wo"] + params["bo"]
    return out.reshape(b, c, H, W)


if __name__ == "__main__":
    # Small shapes consistent with the module (NCHW, d_model == channels).
    # n = 16*16 = 256 -> 2 q-tiles x 2 k-tiles of 128: exercises the flash path.
    b, d_model, H, W = 2, 32, 16, 16
    d_k, d_v, heads = 16, 16, 4

    key = jax.random.PRNGKey(0)
    kp, kq, kk, kv = jax.random.split(key, 4)
    params = init_params(kp, d_model, d_k, d_v, heads)

    x = jax.random.normal(kq, (b, d_model, H, W), jnp.float32)
    keys_in = jax.random.normal(kk, (b, d_model, H, W), jnp.float32)
    values_in = jax.random.normal(kv, (b, d_model, H, W), jnp.float32)

    # ---- f32, self-attention (ConvNeXt path: queries is keys is values) -----
    prep_f32 = prepare_params(params, d_k, d_v, heads, mm_dtype=jnp.float32)
    ref_self = jax.block_until_ready(
        reference_forward(params, x, x, x, d_k, d_v, heads))
    scale_self = float(jnp.max(jnp.abs(ref_self)))

    out_self = jax.block_until_ready(
        scaled_dot_product_attention(prep_f32, x, x, x,
                                     softmax_dtype=jnp.float32,
                                     approx_reciprocal=False))
    assert out_self.shape == (b, d_model, H, W)
    err = float(jnp.max(jnp.abs(out_self - ref_self)))
    assert err <= 1e-3 * scale_self + 1e-7, \
        f"f32 self-attn mismatch: err={err} ref_scale={scale_self}"

    # ---- f32, cross-attention (distinct q / k / v, non-fused-KV path) -------
    ref_x = jax.block_until_ready(
        reference_forward(params, x, keys_in, values_in, d_k, d_v, heads))
    scale_x = float(jnp.max(jnp.abs(ref_x)))
    out_x = jax.block_until_ready(
        scaled_dot_product_attention(prep_f32, x, keys_in, values_in,
                                     softmax_dtype=jnp.float32,
                                     approx_reciprocal=False))
    err_x = float(jnp.max(jnp.abs(out_x - ref_x)))
    assert err_x <= 1e-3 * scale_x + 1e-7, \
        f"f32 cross-attn mismatch: err={err_x} ref_scale={scale_x}"

    # ---- bf16 operands + generation-gated softmax dtype (fast path) ---------
    prep_bf16 = prepare_params(params, d_k, d_v, heads, mm_dtype=jnp.bfloat16)
    out_fast = jax.block_until_ready(
        scaled_dot_product_attention(prep_bf16, x, x, x))
    err_fast = float(jnp.max(jnp.abs(out_fast.astype(jnp.float32) - ref_self)))
    assert err_fast <= 5e-2 * scale_self + 1e-6, \
        f"bf16 mismatch: err={err_fast} ref_scale={scale_self}"

    print("KERNEL_OK")
</pallas_src>

<mosaic_0001>
module attributes {stable_mosaic.version = 11 : i64} {
  func.func @_flash_mha_kernel(%arg0: i32, %arg1: i32, %arg2: i32, %arg3: i32, %arg4: memref<1x128x32xf32, #tpu.memory_space<vmem>>, %arg5: memref<1x128x32xf32, #tpu.memory_space<vmem>>, %arg6: memref<1x32x16xf32, #tpu.memory_space<vmem>>, %arg7: memref<1x1x16xf32, #tpu.memory_space<vmem>>, %arg8: memref<1x32x32xf32, #tpu.memory_space<vmem>>, %arg9: memref<1x1x32xf32, #tpu.memory_space<vmem>>, %arg10: memref<1x16x32xf32, #tpu.memory_space<vmem>>, %arg11: memref<1x32xf32, #tpu.memory_space<vmem>>, %arg12: memref<1x128x32xf32, #tpu.memory_space<vmem>>, %arg13: memref<128x16xf32, #tpu.memory_space<vmem>>, %arg14: memref<128x1xf32, #tpu.memory_space<vmem>>, %arg15: memref<128x1xf32, #tpu.memory_space<vmem>>, %arg16: memref<128x16xf32, #tpu.memory_space<vmem>>, %arg17: memref<128x32xf32, #tpu.memory_space<vmem>>) attributes {dimension_semantics = [#tpu.dimension_semantics<parallel>, #tpu.dimension_semantics<parallel>, #tpu.dimension_semantics<arbitrary>, #tpu.dimension_semantics<arbitrary>], iteration_bounds = array<i64: 2, 2, 4, 2>, scalar_prefetch = 0 : i64, scratch_operands = 5 : i64, tpu.core_type = #tpu.core_type<tc>, window_params = [{transform_indices = @transform_0, window_bounds = array<i64: 1, 128, 32>}, {transform_indices = @transform_1, window_bounds = array<i64: 1, 128, 32>}, {transform_indices = @transform_2, window_bounds = array<i64: 1, 32, 16>}, {transform_indices = @transform_3, window_bounds = array<i64: 1, 1, 16>}, {transform_indices = @transform_4, window_bounds = array<i64: 1, 32, 32>}, {transform_indices = @transform_5, window_bounds = array<i64: 1, 1, 32>}, {transform_indices = @transform_6, window_bounds = array<i64: 1, 16, 32>}, {pipeline_mode = #tpu.pipeline_mode<synchronous>, transform_indices = @transform_7, window_bounds = array<i64: 1, 32>}, {transform_indices = @transform_8, window_bounds = array<i64: 1, 128, 32>}]} {
    %c0_i32 = arith.constant 0 : i32
    %0 = arith.cmpi eq, %arg2, %c0_i32 : i32
    %c0_i32_0 = arith.constant 0 : i32
    %1 = arith.cmpi eq, %arg3, %c0_i32_0 : i32
    %2 = arith.andi %0, %1 : i1
    %3 = arith.extui %2 : i1 to i32
    %c0_i32_1 = arith.constant 0 : i32
    %4 = arith.cmpi ne, %3, %c0_i32_1 : i32
    scf.if %4 {
      %cst_33 = arith.constant 0.000000e+00 : f32
      %51 = vector.broadcast %cst_33 : f32 to vector<128x32xf32>
      %c0_34 = arith.constant 0 : index
      %c0_35 = arith.constant 0 : index
      %52 = vector.load %arg17[%c0_34, %c0_35] : memref<128x32xf32, #tpu.memory_space<vmem>>, vector<128x32xf32>
      tpu.vector_store %arg17[%c0_34, %c0_35], %51 {strides = array<i32>} : memref<128x32xf32, #tpu.memory_space<vmem>>, vector<128x32xf32>,
    } else {
    }
    %c0_i32_2 = arith.constant 0 : i32
    %5 = arith.cmpi eq, %arg3, %c0_i32_2 : i32
    %6 = arith.extui %5 : i1 to i32
    %c0_i32_3 = arith.constant 0 : i32
    %7 = arith.cmpi ne, %6, %c0_i32_3 : i32
    scf.if %7 {
      %c0_33 = arith.constant 0 : index
      %c0_34 = arith.constant 0 : index
      %c0_35 = arith.constant 0 : index
      %51 = vector.load %arg4[%c0_33, %c0_34, %c0_35] : memref<1x128x32xf32, #tpu.memory_space<vmem>>, vector<1x128x32xf32>
      %52 = vector.shape_cast %51 : vector<1x128x32xf32> to vector<128x32xf32>
      %c0_36 = arith.constant 0 : index
      %c0_37 = arith.constant 0 : index
      %c0_38 = arith.constant 0 : index
      %53 = vector.load %arg6[%c0_36, %c0_37, %c0_38] : memref<1x32x16xf32, #tpu.memory_space<vmem>>, vector<1x32x16xf32>
      %54 = vector.shape_cast %53 : vector<1x32x16xf32> to vector<32x16xf32>
      %cst_39 = arith.constant dense<0.000000e+00> : vector<128x16xf32>
      %55 = tpu.matmul %52, %54, %cst_39 {dimension_numbers = #tpu.dot_dimension_numbers<[1], [0], [0], [1], [0, 0, 1, 1], [], []>} : vector<128x32xf32>, vector<32x16xf32>, vector<128x16xf32> -> vector<128x16xf32>
      %c0_40 = arith.constant 0 : index
      %c0_41 = arith.constant 0 : index
      %c0_42 = arith.constant 0 : index
      %56 = vector.load %arg7[%c0_40, %c0_41, %c0_42] : memref<1x1x16xf32, #tpu.memory_space<vmem>>, vector<1x1x16xf32>
      %57 = vector.shape_cast %56 : vector<1x1x16xf32> to vector<1x16xf32>
      %58 = vector.broadcast %57 : vector<1x16xf32> to vector<128x16xf32>
      %59 = arith.addf %55, %58 : vector<128x16xf32>
      %c0_43 = arith.constant 0 : index
      %c0_44 = arith.constant 0 : index
      %60 = vector.load %arg13[%c0_43, %c0_44] : memref<128x16xf32, #tpu.memory_space<vmem>>, vector<128x16xf32>
      tpu.vector_store %arg13[%c0_43, %c0_44], %59 {strides = array<i32>} : memref<128x16xf32, #tpu.memory_space<vmem>>, vector<128x16xf32>,
      %cst_45 = arith.constant 0xFF800000 : f32
      %61 = vector.broadcast %cst_45 : f32 to vector<128x1xf32>
      %c0_46 = arith.constant 0 : index
      %c0_47 = arith.constant 0 : index
      %62 = vector.load %arg14[%c0_46, %c0_47] : memref<128x1xf32, #tpu.memory_space<vmem>>, vector<128x1xf32>
      tpu.vector_store %arg14[%c0_46, %c0_47], %61 {strides = array<i32>} : memref<128x1xf32, #tpu.memory_space<vmem>>, vector<128x1xf32>,
      %cst_48 = arith.constant 0.000000e+00 : f32
      %63 = vector.broadcast %cst_48 : f32 to vector<128x1xf32>
      %c0_49 = arith.constant 0 : index
      %c0_50 = arith.constant 0 : index
      %64 = vector.load %arg15[%c0_49, %c0_50] : memref<128x1xf32, #tpu.memory_space<vmem>>, vector<128x1xf32>
      tpu.vector_store %arg15[%c0_49, %c0_50], %63 {strides = array<i32>} : memref<128x1xf32, #tpu.memory_space<vmem>>, vector<128x1xf32>,
      %cst_51 = arith.constant 0.000000e+00 : f32
      %65 = vector.broadcast %cst_51 : f32 to vector<128x16xf32>
      %c0_52 = arith.constant 0 : index
      %c0_53 = arith.constant 0 : index
      %66 = vector.load %arg16[%c0_52, %c0_53] : memref<128x16xf32, #tpu.memory_space<vmem>>, vector<128x16xf32>
      tpu.vector_store %arg16[%c0_52, %c0_53], %65 {strides = array<i32>} : memref<128x16xf32, #tpu.memory_space<vmem>>, vector<128x16xf32>,
    } else {
    }
    %c0 = arith.constant 0 : index
    %c0_4 = arith.constant 0 : index
    %c0_5 = arith.constant 0 : index
    %8 = vector.load %arg5[%c0, %c0_4, %c0_5] : memref<1x128x32xf32, #tpu.memory_space<vmem>>, vector<1x128x32xf32>
    %9 = vector.shape_cast %8 : vector<1x128x32xf32> to vector<128x32xf32>
    %c0_6 = arith.constant 0 : index
    %c0_7 = arith.constant 0 : index
    %c0_8 = arith.constant 0 : index
    %10 = vector.load %arg8[%c0_6, %c0_7, %c0_8] : memref<1x32x32xf32, #tpu.memory_space<vmem>>, vector<1x32x32xf32>
    %11 = vector.shape_cast %10 : vector<1x32x32xf32> to vector<32x32xf32>
    %cst = arith.constant dense<0.000000e+00> : vector<128x32xf32>
    %12 = tpu.matmul %9, %11, %cst {dimension_numbers = #tpu.dot_dimension_numbers<[1], [0], [0], [1], [0, 0, 1, 1], [], []>} : vector<128x32xf32>, vector<32x32xf32>, vector<128x32xf32> -> vector<128x32xf32>
    %c0_9 = arith.constant 0 : index
    %c0_10 = arith.constant 0 : index
    %c0_11 = arith.constant 0 : index
    %13 = vector.load %arg9[%c0_9, %c0_10, %c0_11] : memref<1x1x32xf32, #tpu.memory_space<vmem>>, vector<1x1x32xf32>
    %14 = vector.shape_cast %13 : vector<1x1x32xf32> to vector<1x32xf32>
    %15 = vector.broadcast %14 : vector<1x32xf32> to vector<128x32xf32>
    %16 = arith.addf %12, %15 : vector<128x32xf32>
    %17 = vector.extract_strided_slice %16 {offsets = [0, 0], sizes = [128, 16], strides = [1, 1]} : vector<128x32xf32> to vector<128x16xf32>
    %18 = vector.extract_strided_slice %16 {offsets = [0, 16], sizes = [128, 16], strides = [1, 1]} : vector<128x32xf32> to vector<128x16xf32>
    %c0_12 = arith.constant 0 : index
    %c0_13 = arith.constant 0 : index
    %19 = vector.load %arg13[%c0_12, %c0_13] : memref<128x16xf32, #tpu.memory_space<vmem>>, vector<128x16xf32>
    %cst_14 = arith.constant dense<0.000000e+00> : vector<128x128xf32>
    %20 = tpu.matmul %19, %17, %cst_14 {dimension_numbers = #tpu.dot_dimension_numbers<[1], [1], [0], [0], [0, 0, 1, 0], [], []>} : vector<128x16xf32>, vector<128x16xf32>, vector<128x128xf32> -> vector<128x128xf32>
    %c0_15 = arith.constant 0 : index
    %c0_16 = arith.constant 0 : index
    %21 = vector.load %arg14[%c0_15, %c0_16] : memref<128x1xf32, #tpu.memory_space<vmem>>, vector<128x1xf32>
    %cst_17 = arith.constant dense<0xFF800000> : vector<128xf32>
    %22 = vector.multi_reduction <maximumf>, %20, %cst_17 [1] : vector<128x128xf32> to vector<128xf32>
    %23 = vector.shape_cast %22 : vector<128xf32> to vector<128x1xf32>
    %24 = arith.maximumf %21, %23 : vector<128x1xf32>
    %25 = arith.subf %21, %24 : vector<128x1xf32>
    %26 = math.exp %25 : vector<128x1xf32>
    %27 = vector.broadcast %24 : vector<128x1xf32> to vector<128x128xf32>
    %28 = arith.subf %20, %27 : vector<128x128xf32>
    %29 = math.exp %28 : vector<128x128xf32>
    %c0_18 = arith.constant 0 : index
    %c0_19 = arith.constant 0 : index
    %30 = vector.load %arg15[%c0_18, %c0_19] : memref<128x1xf32, #tpu.memory_space<vmem>>, vector<128x1xf32>
    %31 = arith.mulf %26, %30 : vector<128x1xf32>
    %cst_20 = arith.constant dense<0.000000e+00> : vector<128xf32>
    %32 = vector.multi_reduction <add>, %29, %cst_20 [1] : vector<128x128xf32> to vector<128xf32>
    %33 = vector.shape_cast %32 : vector<128xf32> to vector<128x1xf32>
    %34 = arith.addf %31, %33 : vector<128x1xf32>
    %c0_21 = arith.constant 0 : index
    %c0_22 = arith.constant 0 : index
    %35 = vector.load %arg15[%c0_21, %c0_22] : memref<128x1xf32, #tpu.memory_space<vmem>>, vector<128x1xf32>
    tpu.vector_store %arg15[%c0_21, %c0_22], %34 {strides = array<i32>} : memref<128x1xf32, #tpu.memory_space<vmem>>, vector<128x1xf32>,
    %c0_23 = arith.constant 0 : index
    %c0_24 = arith.constant 0 : index
    %36 = vector.load %arg16[%c0_23, %c0_24] : memref<128x16xf32, #tpu.memory_space<vmem>>, vector<128x16xf32>
    %37 = vector.broadcast %26 : vector<128x1xf32> to vector<128x16xf32>
    %38 = arith.mulf %37, %36 : vector<128x16xf32>
    %cst_25 = arith.constant dense<0.000000e+00> : vector<128x16xf32>
    %39 = tpu.matmul %29, %18, %cst_25 {dimension_numbers = #tpu.dot_dimension_numbers<[1], [0], [0], [1], [0, 0, 1, 1], [], []>} : vector<128x128xf32>, vector<128x16xf32>, vector<128x16xf32> -> vector<128x16xf32>
    %40 = arith.addf %38, %39 : vector<128x16xf32>
    %c0_26 = arith.constant 0 : index
    %c0_27 = arith.constant 0 : index
    %41 = vector.load %arg16[%c0_26, %c0_27] : memref<128x16xf32, #tpu.memory_space<vmem>>, vector<128x16xf32>
    tpu.vector_store %arg16[%c0_26, %c0_27], %40 {strides = array<i32>} : memref<128x16xf32, #tpu.memory_space<vmem>>, vector<128x16xf32>,
    %c0_28 = arith.constant 0 : index
    %c0_29 = arith.constant 0 : index
    %42 = vector.load %arg14[%c0_28, %c0_29] : memref<128x1xf32, #tpu.memory_space<vmem>>, vector<128x1xf32>
    tpu.vector_store %arg14[%c0_28, %c0_29], %24 {strides = array<i32>} : memref<128x1xf32, #tpu.memory_space<vmem>>, vector<128x1xf32>,
    %c1_i32 = arith.constant 1 : i32
    %43 = arith.cmpi eq, %arg3, %c1_i32 : i32
    %44 = arith.extui %43 : i1 to i32
    %c0_i32_30 = arith.constant 0 : i32
    %45 = arith.cmpi ne, %44, %c0_i32_30 : i32
    scf.if %45 {
      %c0_33 = arith.constant 0 : index
      %c0_34 = arith.constant 0 : index
      %51 = vector.load %arg15[%c0_33, %c0_34] : memref<128x1xf32, #tpu.memory_space<vmem>>, vector<128x1xf32>
      %cst_35 = arith.constant 1.000000e+00 : f32
      %52 = vector.broadcast %cst_35 : f32 to vector<128x1xf32>
      %53 = arith.divf %52, %51 : vector<128x1xf32>
      %c0_36 = arith.constant 0 : index
      %c0_37 = arith.constant 0 : index
      %54 = vector.load %arg16[%c0_36, %c0_37] : memref<128x16xf32, #tpu.memory_space<vmem>>, vector<128x16xf32>
      %55 = vector.broadcast %53 : vector<128x1xf32> to vector<128x16xf32>
      %56 = arith.mulf %54, %55 : vector<128x16xf32>
      %c0_38 = arith.constant 0 : index
      %c0_39 = arith.constant 0 : index
      %57 = vector.load %arg17[%c0_38, %c0_39] : memref<128x32xf32, #tpu.memory_space<vmem>>, vector<128x32xf32>
      %c0_40 = arith.constant 0 : index
      %c0_41 = arith.constant 0 : index
      %c0_42 = arith.constant 0 : index
      %58 = vector.load %arg10[%c0_40, %c0_41, %c0_42] : memref<1x16x32xf32, #tpu.memory_space<vmem>>, vector<1x16x32xf32>
      %59 = vector.shape_cast %58 : vector<1x16x32xf32> to vector<16x32xf32>
      %cst_43 = arith.constant dense<0.000000e+00> : vector<128x32xf32>
      %60 = tpu.matmul %56, %59, %cst_43 {dimension_numbers = #tpu.dot_dimension_numbers<[1], [0], [0], [1], [0, 0, 1, 1], [], []>} : vector<128x16xf32>, vector<16x32xf32>, vector<128x32xf32> -> vector<128x32xf32>
      %61 = arith.addf %57, %60 : vector<128x32xf32>
      %c0_44 = arith.constant 0 : index
      %c0_45 = arith.constant 0 : index
      %62 = vector.load %arg17[%c0_44, %c0_45] : memref<128x32xf32, #tpu.memory_space<vmem>>, vector<128x32xf32>
      tpu.vector_store %arg17[%c0_44, %c0_45], %61 {strides = array<i32>} : memref<128x32xf32, #tpu.memory_space<vmem>>, vector<128x32xf32>,
    } else {
    }
    %c3_i32 = arith.constant 3 : i32
    %46 = arith.cmpi eq, %arg2, %c3_i32 : i32
    %c1_i32_31 = arith.constant 1 : i32
    %47 = arith.cmpi eq, %arg3, %c1_i32_31 : i32
    %48 = arith.andi %46, %47 : i1
    %49 = arith.extui %48 : i1 to i32
    %c0_i32_32 = arith.constant 0 : i32
    %50 = arith.cmpi ne, %49, %c0_i32_32 : i32
    scf.if %50 {
      %c0_33 = arith.constant 0 : index
      %c0_34 = arith.constant 0 : index
      %51 = vector.load %arg17[%c0_33, %c0_34] : memref<128x32xf32, #tpu.memory_space<vmem>>, vector<128x32xf32>
      %c0_35 = arith.constant 0 : index
      %c0_36 = arith.constant 0 : index
      %52 = vector.load %arg11[%c0_35, %c0_36] : memref<1x32xf32, #tpu.memory_space<vmem>>, vector<1x32xf32>
      %53 = vector.broadcast %52 : vector<1x32xf32> to vector<128x32xf32>
      %54 = arith.addf %51, %53 : vector<128x32xf32>
      %c0_37 = arith.constant 0 : index
      %c0_38 = arith.constant 0 : index
      %c0_39 = arith.constant 0 : index
      %55 = vector.load %arg12[%c0_37, %c0_38, %c0_39] : memref<1x128x32xf32, #tpu.memory_space<vmem>>, vector<1x128x32xf32>
      %56 = vector.shape_cast %55 : vector<1x128x32xf32> to vector<128x32xf32>
      %57 = vector.shape_cast %54 : vector<128x32xf32> to vector<1x128x32xf32>
      tpu.vector_store %arg12[%c0_37, %c0_38, %c0_39], %57 {strides = array<i32>} : memref<1x128x32xf32, #tpu.memory_space<vmem>>, vector<1x128x32xf32>,
    } else {
    }
    return
  }
  func.func @transform_0(%arg0: i32, %arg1: i32, %arg2: i32, %arg3: i32) -> (i32, i32, i32) {
    %c0_i32 = arith.constant 0 : i32
    %c0_i32_0 = arith.constant 0 : i32
    return %arg0, %arg1, %c0_i32 : i32, i32, i32
  }
  func.func @transform_1(%arg0: i32, %arg1: i32, %arg2: i32, %arg3: i32) -> (i32, i32, i32) {
    %c0_i32 = arith.constant 0 : i32
    %c0_i32_0 = arith.constant 0 : i32
    return %arg0, %arg3, %c0_i32 : i32, i32, i32
  }
  func.func @transform_2(%arg0: i32, %arg1: i32, %arg2: i32, %arg3: i32) -> (i32, i32, i32) {
    %c0_i32 = arith.constant 0 : i32
    %c0_i32_0 = arith.constant 0 : i32
    %c0_i32_1 = arith.constant 0 : i32
    return %arg2, %c0_i32, %c0_i32_0 : i32, i32, i32
  }
  func.func @transform_3(%arg0: i32, %arg1: i32, %arg2: i32, %arg3: i32) -> (i32, i32, i32) {
    %c0_i32 = arith.constant 0 : i32
    %c0_i32_0 = arith.constant 0 : i32
    %c0_i32_1 = arith.constant 0 : i32
    return %arg2, %c0_i32, %c0_i32_0 : i32, i32, i32
  }
  func.func @transform_4(%arg0: i32, %arg1: i32, %arg2: i32, %arg3: i32) -> (i32, i32, i32) {
    %c0_i32 = arith.constant 0 : i32
    %c0_i32_0 = arith.constant 0 : i32
    %c0_i32_1 = arith.constant 0 : i32
    return %arg2, %c0_i32, %c0_i32_0 : i32, i32, i32
  }
  func.func @transform_5(%arg0: i32, %arg1: i32, %arg2: i32, %arg3: i32) -> (i32, i32, i32) {
    %c0_i32 = arith.constant 0 : i32
    %c0_i32_0 = arith.constant 0 : i32
    %c0_i32_1 = arith.constant 0 : i32
    return %arg2, %c0_i32, %c0_i32_0 : i32, i32, i32
  }
  func.func @transform_6(%arg0: i32, %arg1: i32, %arg2: i32, %arg3: i32) -> (i32, i32, i32) {
    %c0_i32 = arith.constant 0 : i32
    %c0_i32_0 = arith.constant 0 : i32
    %c0_i32_1 = arith.constant 0 : i32
    return %arg2, %c0_i32, %c0_i32_0 : i32, i32, i32
  }
  func.func @transform_7(%arg0: i32, %arg1: i32, %arg2: i32, %arg3: i32) -> (i32, i32) {
    %c0_i32 = arith.constant 0 : i32
    %c0_i32_0 = arith.constant 0 : i32
    %c0_i32_1 = arith.constant 0 : i32
    return %c0_i32, %c0_i32_0 : i32, i32
  }
  func.func @transform_8(%arg0: i32, %arg1: i32, %arg2: i32, %arg3: i32) -> (i32, i32, i32) {
    %c0_i32 = arith.constant 0 : i32
    %c0_i32_0 = arith.constant 0 : i32
    return %arg0, %arg1, %c0_i32 : i32, i32, i32
  }
}

</mosaic_0001>

<bundles_post_ra>
// kernel: tpu_custom_call.1
= control target key start
LH: loop header
LB: loop body
LE: loop exit
PB: predicated region body
PF: predicated region fallthrough
CT: control target
= control target key end

     0   :  { %s3489_s27 = smov 0   ;;  %s3491_s28 = smov 0   ;;  %s4363_s0 = inlined_call_operand.vmem [shape: f32[2,256,32], index: 0, kind: input, shape index: {}]   ;;  %s4364_s1 = inlined_call_operand.vmem [shape: f32[2,256,32], index: 1, kind: input, shape index: {}]   ;;  %s4365_s2 = inlined_call_operand.vmem [shape: f32[4,32,16], index: 2, kind: input, shape index: {}]   ;;  %s4366_s3 = inlined_call_operand.vmem [shape: f32[4,1,16], index: 3, kind: input, shape index: {}]   ;;  %s4367_s4 = inlined_call_operand.vmem [shape: f32[4,32,32], index: 4, kind: input, shape index: {}]   ;;  %s4368_s5 = inlined_call_operand.vmem [shape: f32[4,1,32], index: 5, kind: input, shape index: {}]   ;;  %s4369_s6 = inlined_call_operand.vmem [shape: f32[4,16,32], index: 6, kind: input, shape index: {}]   ;;  %s4370_s7 = inlined_call_operand.vmem [shape: f32[1,32], index: 7, kind: input, shape index: {}]   ;;  %s4371_s8 = inlined_call_operand.vmem [shape: f32[2,256,32], index: 8, kind: output, shape index: {}]  }
   0x1   :  { %4374 = sst [smem:[#allocation13_spill]] %s4363_s0  ;;  %s3493_s29 = smov 0  }
   0x2   :  { %4375 = sst [smem:[#allocation14_spill]] %s4364_s1  ;;  %s3495_s30 = smov 0  }
   0x3   :  { %4376 = sst [smem:[#allocation15_spill]] %s4371_s8  ;;  %s3497_s9 = smov 0  }
   0x4   :  { %s3499_s10 = smov 0   ;;  %s3501_s11 = smov 0  }
   0x5   :  { %s3503_s12 = smov 0   ;;  %s3505_s13 = smov 0  }
   0x6 LB: > { %4377 = sst [smem:[#allocation7_spill]] %s3428_s11  ;;  %s33_s14 = sadd.s32 1, %s3420_s9  ;;  %s3436_s13 = sphi %s3505_s13, %s18_s13   ;;  %s3432_s12 = sphi %s3503_s12, %s4393_s12   ;;  %s3428_s11 = sphi %s3501_s11, %s4392_s11   ;;  %s3424_s10 = sphi %s3499_s10, %s4397_s10   ;;  %s3420_s9 = sphi %s3497_s9, %s4396_s9   ;;  %s3416_s30 = sphi %s3495_s30, %s4389_s30   ;;  %s3412_s29 = sphi %s3493_s29, %s4388_s29   ;;  %s3408_s28 = sphi %s3491_s28, %s4395_s28   ;;  %s3404_s27 = sphi %s3489_s27, %s4394_s27  }
   0x7   : > { %4378 = sst [smem:[#allocation8_spill]] %s3432_s12  ;;  %p34_p0 = scmp.ge.s32.totalorder %s33_s14, 2 }
   0x8   : > { %s36_s15 = sadd.s32 1, %s3424_s10  ;;  %p2610_p1 = scmp.ge.s32.totalorder %s3436_s13, 1 }
   0x9   : > { %s4399_s14 = smov (%p34_p0, %s33_s14), 0  ;;  %s4401_s15 = smov (!%p34_p0, %s36_s15), %s3424_s10 }
   0xa   : > { %4379 = sst [smem:[#allocation9_spill]] %s4399_s14  ;;  %p360_p2 = scmp.lt.s32.totalorder %s3436_s13, 33 }
   0xb   : > { %p38_p3 = scmp.ge.s32.totalorder %s4401_s15, 4  ;;  %s40_s16 = sadd.s32 1, %s3428_s11 }
   0xc   : > { %p361_p4 = pnand %p2610_p1, %p360_p2  ;;  %s44_s17 = sadd.s32 1, %s3432_s12 }
   0xd   : > { %s4403_s15 = smov (%p38_p3, %s4401_s15), 0  ;;  %s4405_s16 = smov (!%p38_p3, %s40_s16), %s3428_s11 }
   0xe   : > { %4380 = sst [smem:[#allocation10_spill]] %s4403_s15  ;;  %p42_p5 = scmp.ge.s32.totalorder %s4405_s16, 2 }
   0xf   : > { %364 = sbr.rel (%p361_p4) target bundleno = 1706 (0x6aa), region = 52  ;;  %s2611_s18 = sshll.u32 (!%p361_p4), %s3412_s29, 4 }
  0x10   : > { %s4407_s16 = smov (%p42_p5, %s4405_s16), 0  ;;  %s4409_s17 = smov (!%p42_p5, %s44_s17), %s3432_s12 }
  0x11   : > { %4381 = sst [smem:[#allocation11_spill]] %s4407_s16  ;;  %p46_p6 = scmp.ge.s32.totalorder %s4409_s17, 2 }
  0x12   : > { %p433_p7 = scmp.lt.s32.totalorder (!%p361_p4), %s3416_s30, 1  ;;  %p435_p8 = scmp.lt.s32.totalorder (!%p361_p4), %s2611_s18, 31 }
  0x13   : > { %s4411_s17 = smov (%p46_p6, %s4409_s17), 0  ;;  %s2614_s19 = sshll.u32 (!%p361_p4), %s3404_s27, 4 }
  0x14   : > { %4382 = sst [smem:[#allocation12_spill]] %s4411_s17  ;;  %p445_p9 = scmp.lt.s32.totalorder (!%p361_p4), %s2614_s19, 31 }
  0x15   : > { %p452_p10 = scmp.lt.s32.totalorder (!%p361_p4), %s3408_s28, 3  ;;  %p483_p11 = scmp.eq.s32.totalorder (!%p361_p4), %s3408_s28, 0 }
  0x16   : > { %s4413_s30 = smov (!%p433_p7, %s3416_s30), 1  ;;  %s4415_s18 = smov (!%p435_p8, %s2611_s18), 31 }
  0x17   : > { %s2612_s20 = sshll.u32 %s4413_s30, 5  ;;  %s4383_s0 = sld [smem:[#allocation13_spill]] }
  0x18   : > { %s438_s21 = sadd.s32 %s2612_s20, %s4415_s18  ;;  %s4384_s8 = sld [smem:[#allocation15_spill]] }
  0x19   : > { %s2613_s22 = sshll.u32 %s438_s21, 3  ;;  %s4417_s19 = smov (!%p445_p9, %s2614_s19), 31 }
  0x1a   : > { %s3564_s16 = scalar_select %p452_p10, %s3408_s28, 3 }
  0x1b   : > { %s448_s30 = sadd.s32 %s2612_s20, %s4417_s19  ;;  %p484_p12 = scmp.eq.s32.totalorder %s3404_s27, 0 }
  0x1c   : > { %s2616_s18 = sshll.u32 %s448_s30, 3  ;;  %s2713_s21 = sshll.u32 %s3564_s16, 5 }
  0x1d   : > { %s3556_s25 = scalar_lea.vmem %s4383_s0, %s2613_s22  ;;  %s4385_s1 = sld [smem:[#allocation14_spill]] }
  0x1e   : > { %s3561_s17 = scalar_lea.vmem %s4384_s8, %s2613_s22  ;;  %s3576_s22 = scalar_lea.vmem %s4365_s2, %s2713_s21 }
  0x1f   : > { %s459_s14 = scalar_lea.vmem %s4366_s3, %s3564_s16  ;;  %s3585_s19 = scalar_lea.vmem %s4367_s4, %s2713_s21 }
  0x20   : > { %s467_s23 = scalar_lea.vmem %s4368_s5, %s3564_s16  ;;  %p485_p13 = pnand %p484_p12, %p483_p11 }
  0x21   : > { %vm489_vm0 = vcmask (!%p485_p13), 261120   ;;  %v3438_v0 = vmov (!%p485_p13), 0.0  }
  0x22   : > { %488 = sbr.rel (%p485_p13) target bundleno = 42 (0x2a), region = 56  ;;  %490 = vst.msk [vmem:[#allocation6] sm:$0xff] (!%p485_p13), %vm489_vm0, %v3438_v0  ;;  %491 = vst.msk [vmem:[#allocation6 + $0x8] sm:$0xff] (!%p485_p13), %vm489_vm0, %v3438_v0 }
  0x23   : > { %s3571_s0 = scalar_lea.vmem %s4385_s1, %s2616_s18  ;;  %s2715_s18 = sshll.u32 %s3564_s16, 4  ;;  %492 = vst.msk [vmem:[#allocation6 + $0x10] sm:$0xff] (!%p485_p13), %vm489_vm0, %v3438_v0  ;;  %493 = vst.msk [vmem:[#allocation6 + $0x18] sm:$0xff] (!%p485_p13), %vm489_vm0, %v3438_v0 }
  0x24   : > { %s3595_s15 = scalar_lea.vmem %s4369_s6, %s2715_s18  ;;  %494 = vst.msk [vmem:[#allocation6 + $0x20] sm:$0xff] (!%p485_p13), %vm489_vm0, %v3438_v0  ;;  %495 = vst.msk [vmem:[#allocation6 + $0x28] sm:$0xff] (!%p485_p13), %vm489_vm0, %v3438_v0 }
  0x25   : > { %496 = vst.msk [vmem:[#allocation6 + $0x30] sm:$0xff] (!%p485_p13), %vm489_vm0, %v3438_v0  ;;  %497 = vst.msk [vmem:[#allocation6 + $0x38] sm:$0xff] (!%p485_p13), %vm489_vm0, %v3438_v0 }
  0x26   : > { %498 = vst.msk [vmem:[#allocation6 + $0x40] sm:$0xff] (!%p485_p13), %vm489_vm0, %v3438_v0  ;;  %499 = vst.msk [vmem:[#allocation6 + $0x48] sm:$0xff] (!%p485_p13), %vm489_vm0, %v3438_v0 }
  0x27   : > { %500 = vst.msk [vmem:[#allocation6 + $0x50] sm:$0xff] (!%p485_p13), %vm489_vm0, %v3438_v0  ;;  %501 = vst.msk [vmem:[#allocation6 + $0x58] sm:$0xff] (!%p485_p13), %vm489_vm0, %v3438_v0 }
  0x28   : > { %502 = vst.msk [vmem:[#allocation6 + $0x60] sm:$0xff] (!%p485_p13), %vm489_vm0, %v3438_v0  ;;  %503 = vst.msk [vmem:[#allocation6 + $0x68] sm:$0xff] (!%p485_p13), %vm489_vm0, %v3438_v0 }
  0x29   : > { %504 = vst.msk [vmem:[#allocation6 + $0x70] sm:$0xff] %vm489_vm0, %v3438_v0  ;;  %505 = vst.msk [vmem:[#allocation6 + $0x78] sm:$0xff] %vm489_vm0, %v3438_v0 }
  0x2a PF: > { %p2626_p0 = scmp.ne.s32.totalorder %s3404_s27, 0 }
  0x2b   : > { %v525_v1 = vld [vmem:[%s3576_s22] sm:$0xff] (!%p2626_p0)  ;;  %v526_v2 = vld [vmem:[%s3576_s22 + $0x8] sm:$0xff] (!%p2626_p0)  ;;  %v527_v3 = vld [vmem:[%s3576_s22 + $0x10] sm:$0xff] (!%p2626_p0)  ;;  %vm536_vm1 = vcmask (!%p2626_p0), 261120   ;;  %vm730_vm2 = vcmask (!%p2626_p0), 130048   ;;  %vm747_vm3 = vcmask (!%p2626_p0), 7168  }
  0x2c   : > { %508 = sbr.rel (%p2626_p0) target bundleno = 283 (0x11b), region = 60  ;;  %v3042_v4 = vpack.c.bf16 (!%p2626_p0), %v526_v2, %v525_v1  ;;  %v528_v5 = vld [vmem:[%s3576_s22 + $0x18] sm:$0xff] (!%p2626_p0)  ;;  %v509_v6 = vld [vmem:[%s3556_s25] sm:$0xff] (!%p2626_p0)  ;;  %v510_v9 = vld [vmem:[%s3556_s25 + $0x8] sm:$0xff] (!%p2626_p0)  ;;  %v3439_v23 = vmov (!%p2626_p0), -inf   ;;  %v3440_v24 = vmov (!%p2626_p0), 0.0  }
  0x2d   : > { %v517_v7 = vld [vmem:[%s3556_s25 + $0x40] sm:$0xff] (!%p2626_p0)  ;;  %v3046_v8 = vpack.c.bf16 (!%p2626_p0), %v528_v5, %v527_v3  ;;  %2846 = vmatprep.mubr.msk.f32.mxu0 (!%p2626_p0), %vm536_vm1, %v509_v6  ;;  %v518_v10 = vld [vmem:[%s3556_s25 + $0x48] sm:$0xff] (!%p2626_p0)  ;;  %v511_v11 = vld [vmem:[%s3556_s25 + $0x10] sm:$0xff] (!%p2626_p0)  ;;  %748 = vst.msk [vmem:[#allocation3] sm:$0xff] (!%p2626_p0), %vm747_vm3, %v3439_v23 }
  0x2e   : > { %2858 = vmatprep.mubr.msk.f32.mxu1 (!%p2626_p0), %vm536_vm1, %v517_v7  ;;  %3043 = vmatprep.subr.bf16.mxu0 (!%p2626_p0), %v3042_v4  ;;  %v519_v12 = vld [vmem:[%s3556_s25 + $0x50] sm:$0xff] (!%p2626_p0)  ;;  %v512_v13 = vld [vmem:[%s3556_s25 + $0x18] sm:$0xff] (!%p2626_p0)  ;;  %v513_v15 = vld [vmem:[%s3556_s25 + $0x20] sm:$0xff] (!%p2626_p0)  ;;  %749 = vst.msk [vmem:[#allocation3 + $0x8] sm:$0xff] (!%p2626_p0), %vm747_vm3, %v3439_v23 }
  0x2f   : > { %3142 = vmatprep.subr.bf16.mxu1 (!%p2626_p0), %v3042_v4  ;;  %3045 = vmatpush3.bf16.msra.mxu0 (!%p2626_p0), %v3042_v4  ;;  %v520_v14 = vld [vmem:[%s3556_s25 + $0x58] sm:$0xff] (!%p2626_p0)  ;;  %v521_v16 = vld [vmem:[%s3556_s25 + $0x60] sm:$0xff] (!%p2626_p0)  ;;  %v514_v17 = vld [vmem:[%s3556_s25 + $0x28] sm:$0xff] (!%p2626_p0)  ;;  %750 = vst.msk [vmem:[#allocation3 + $0x10] sm:$0xff] (!%p2626_p0), %vm747_vm3, %v3439_v23 }
  0x30   : > { %3144 = vmatpush3.bf16.msra.mxu1 (!%p2626_p0), %v3042_v4  ;;  %3047 = vmatprep.subr.bf16.mxu0 (!%p2626_p0), %v3046_v8  ;;  %v522_v18 = vld [vmem:[%s3556_s25 + $0x68] sm:$0xff] (!%p2626_p0)  ;;  %v515_v19 = vld [vmem:[%s3556_s25 + $0x30] sm:$0xff] (!%p2626_p0)  ;;  %v516_v21 = vld [vmem:[%s3556_s25 + $0x38] sm:$0xff] (!%p2626_p0)  ;;  %751 = vst.msk [vmem:[#allocation3 + $0x18] sm:$0xff] (!%p2626_p0), %vm747_vm3, %v3439_v23 }
  0x31   : > { %3143 = vmatprep.subr.bf16.mxu1 (!%p2626_p0), %v3046_v8  ;;  %v523_v20 = vld [vmem:[%s3556_s25 + $0x70] sm:$0xff] (!%p2626_p0)  ;;  %v524_v22 = vld [vmem:[%s3556_s25 + $0x78] sm:$0xff] (!%p2626_p0)  ;;  %752 = vst.msk [vmem:[#allocation3 + $0x20] sm:$0xff] (!%p2626_p0), %vm747_vm3, %v3439_v23  ;;  %753 = vst.msk [vmem:[#allocation3 + $0x28] sm:$0xff] (!%p2626_p0), %vm747_vm3, %v3439_v23 }
  0x32   : > { %754 = vst.msk [vmem:[#allocation3 + $0x30] sm:$0xff] (!%p2626_p0), %vm747_vm3, %v3439_v23  ;;  %755 = vst.msk [vmem:[#allocation3 + $0x38] sm:$0xff] (!%p2626_p0), %vm747_vm3, %v3439_v23  ;;  %v2627_v25 = vld [vmem:[%s459_s14] ss:$0 sm:$0xff] (!%p2626_p0) }
  0x33   : > { %3049 = vmatpush3.bf16.msra.mxu0 %v3046_v8  ;;  %756 = vst.msk [vmem:[#allocation3 + $0x40] sm:$0xff] %vm747_vm3, %v3439_v23  ;;  %757 = vst.msk [vmem:[#allocation3 + $0x48] sm:$0xff] %vm747_vm3, %v3439_v23 }
  0x34   : > { %3145 = vmatpush3.bf16.msra.mxu1 %v3046_v8  ;;  %758 = vst.msk [vmem:[#allocation3 + $0x50] sm:$0xff] %vm747_vm3, %v3439_v23  ;;  %759 = vst.msk [vmem:[#allocation3 + $0x58] sm:$0xff] %vm747_vm3, %v3439_v23 }
  0x35   : > { %760 = vst.msk [vmem:[#allocation3 + $0x60] sm:$0xff] %vm747_vm3, %v3439_v23  ;;  %761 = vst.msk [vmem:[#allocation3 + $0x68] sm:$0xff] %vm747_vm3, %v3439_v23 }
  0x36   : > { %2847 = vmatmul.mubr.msk.f32.vlgmr.msra.gmra.mrb[0].mxu0 %vm536_vm1, %v510_v9  ;;  %762 = vst.msk [vmem:[#allocation3 + $0x70] sm:$0xff] %vm747_vm3, %v3439_v23  ;;  %763 = vst.msk [vmem:[#allocation3 + $0x78] sm:$0xff] %vm747_vm3, %v3439_v23 }
  0x37   : > { %2859 = vmatmul.mubr.msk.f32.vlgmr.msra.gmra.mrb[0].mxu1 %vm536_vm1, %v518_v10  ;;  %2849 = vmatprep.mubr.msk.f32.mxu0 %vm536_vm1, %v511_v11  ;;  %764 = vst.msk [vmem:[#allocation4] sm:$0xff] %vm747_vm3, %v3440_v24  ;;  %765 = vst.msk [vmem:[#allocation4 + $0x8] sm:$0xff] %vm747_vm3, %v3440_v24 }
  0x38   : > { %2861 = vmatprep.mubr.msk.f32.mxu1 %vm536_vm1, %v519_v12  ;;  %766 = vst.msk [vmem:[#allocation4 + $0x10] sm:$0xff] %vm747_vm3, %v3440_v24  ;;  %767 = vst.msk [vmem:[#allocation4 + $0x18] sm:$0xff] %vm747_vm3, %v3440_v24 }
  0x39   : > { %768 = vst.msk [vmem:[#allocation4 + $0x20] sm:$0xff] %vm747_vm3, %v3440_v24  ;;  %769 = vst.msk [vmem:[#allocation4 + $0x28] sm:$0xff] %vm747_vm3, %v3440_v24 }
  0x3a   : > { %2850 = vmatmul.mubr.msk.f32.gmra.mrb[2].mxu0 %vm536_vm1, %v512_v13  ;;  %770 = vst.msk [vmem:[#allocation4 + $0x30] sm:$0xff] %vm747_vm3, %v3440_v24  ;;  %771 = vst.msk [vmem:[#allocation4 + $0x38] sm:$0xff] %vm747_vm3, %v3440_v24 }
  0x3b   : > { %2862 = vmatmul.mubr.msk.f32.gmra.mrb[2].mxu1 %vm536_vm1, %v520_v14  ;;  %2852 = vmatprep.mubr.msk.f32.mxu0 %vm536_vm1, %v513_v15  ;;  %772 = vst.msk [vmem:[#allocation4 + $0x40] sm:$0xff] %vm747_vm3, %v3440_v24  ;;  %773 = vst.msk [vmem:[#allocation4 + $0x48] sm:$0xff] %vm747_vm3, %v3440_v24 }
  0x3c   : > { %2864 = vmatprep.mubr.msk.f32.mxu1 %vm536_vm1, %v521_v16  ;;  %774 = vst.msk [vmem:[#allocation4 + $0x50] sm:$0xff] %vm747_vm3, %v3440_v24  ;;  %775 = vst.msk [vmem:[#allocation4 + $0x58] sm:$0xff] %vm747_vm3, %v3440_v24 }
  0x3d   : > { %776 = vst.msk [vmem:[#allocation4 + $0x60] sm:$0xff] %vm747_vm3, %v3440_v24  ;;  %777 = vst.msk [vmem:[#allocation4 + $0x68] sm:$0xff] %vm747_vm3, %v3440_v24 }
  0x3e   : > { %2853 = vmatmul.mubr.msk.f32.gmra.mrb[4].mxu0 %vm536_vm1, %v514_v17  ;;  %778 = vst.msk [vmem:[#allocation4 + $0x70] sm:$0xff] %vm747_vm3, %v3440_v24  ;;  %779 = vst.msk [vmem:[#allocation4 + $0x78] sm:$0xff] %vm747_vm3, %v3440_v24 }
  0x3f   : > { %2865 = vmatmul.mubr.msk.f32.gmra.mrb[4].mxu1 %vm536_vm1, %v522_v18  ;;  %2855 = vmatprep.mubr.msk.f32.mxu0 %vm536_vm1, %v515_v19  ;;  %780 = vst.msk [vmem:[#allocation5] sm:$0xff] %vm730_vm2, %v3440_v24  ;;  %781 = vst.msk [vmem:[#allocation5 + $0x8] sm:$0xff] %vm730_vm2, %v3440_v24 }
  0x40   : > { %2867 = vmatprep.mubr.msk.f32.mxu1 %vm536_vm1, %v523_v20  ;;  %782 = vst.msk [vmem:[#allocation5 + $0x10] sm:$0xff] %vm730_vm2, %v3440_v24  ;;  %783 = vst.msk [vmem:[#allocation5 + $0x18] sm:$0xff] %vm730_vm2, %v3440_v24 }
  0x41   : > { %784 = vst.msk [vmem:[#allocation5 + $0x20] sm:$0xff] %vm730_vm2, %v3440_v24  ;;  %785 = vst.msk [vmem:[#allocation5 + $0x28] sm:$0xff] %vm730_vm2, %v3440_v24 }
  0x42   : > { %2856 = vmatmul.mubr.msk.f32.gmra.mrb[6].mxu0 %vm536_vm1, %v516_v21  ;;  %786 = vst.msk [vmem:[#allocation5 + $0x30] sm:$0xff] %vm730_vm2, %v3440_v24  ;;  %787 = vst.msk [vmem:[#allocation5 + $0x38] sm:$0xff] %vm730_vm2, %v3440_v24 }
  0x43   : > { %2868 = vmatmul.mubr.msk.f32.gmra.mrb[6].mxu1 %vm536_vm1, %v524_v22  ;;  %788 = vst.msk [vmem:[#allocation5 + $0x40] sm:$0xff] %vm730_vm2, %v3440_v24  ;;  %789 = vst.msk [vmem:[#allocation5 + $0x48] sm:$0xff] %vm730_vm2, %v3440_v24 }
  0x44   : > { %790 = vst.msk [vmem:[#allocation5 + $0x50] sm:$0xff] %vm730_vm2, %v3440_v24  ;;  %791 = vst.msk [vmem:[#allocation5 + $0x58] sm:$0xff] %vm730_vm2, %v3440_v24 }
  0x45   : > { %792 = vst.msk [vmem:[#allocation5 + $0x60] sm:$0xff] %vm730_vm2, %v3440_v24  ;;  %793 = vst.msk [vmem:[#allocation5 + $0x68] sm:$0xff] %vm730_vm2, %v3440_v24 }
  0x46   : > { %794 = vst.msk [vmem:[#allocation5 + $0x70] sm:$0xff] %vm730_vm2, %v3440_v24  ;;  %795 = vst.msk [vmem:[#allocation5 + $0x78] sm:$0xff] %vm730_vm2, %v3440_v24 }
 0x109   : > { %v2848_v26 = vpop.f32.mrb[0].mxu0 }
 0x10a   : > { %v2860_v27 = vpop.f32.mrb[0].mxu1  ;;  %v657_v28 = vadd.f32 %v2848_v26, %v2627_v25  ;;  %v651_v30 = vpop.f32.mrb[1].mxu0 }
 0x10b   : > { %v697_v29 = vadd.f32 %v2860_v27, %v2627_v25  ;;  %v691_v31 = vpop.f32.mrb[1].mxu1  ;;  %v652_v32 = vadd.f32 %v2627_v25, %v651_v30 }
 0x10c   : > { %v692_v33 = vadd.f32 %v2627_v25, %v691_v31  ;;  %732 = vst.msk [vmem:[#allocation2 + $0x8] sm:$0xff] %vm730_vm2, %v657_v28 }
 0x10d   : > { %740 = vst.msk [vmem:[#allocation2 + $0x48] sm:$0xff] %vm730_vm2, %v697_v29  ;;  %731 = vst.msk [vmem:[#allocation2] sm:$0xff] %vm730_vm2, %v652_v32  ;;  %v2851_v34 = vpop.f32.mrb[2].mxu0 }
 0x10e   : > { %739 = vst.msk [vmem:[#allocation2 + $0x40] sm:$0xff] %vm730_vm2, %v692_v33  ;;  %v2863_v35 = vpop.f32.mrb[2].mxu1  ;;  %v667_v36 = vadd.f32 %v2851_v34, %v2627_v25  ;;  %v661_v38 = vpop.f32.mrb[3].mxu0 }
 0x10f   : > { %v707_v37 = vadd.f32 %v2863_v35, %v2627_v25  ;;  %v701_v39 = vpop.f32.mrb[3].mxu1  ;;  %v662_v40 = vadd.f32 %v2627_v25, %v661_v38 }
 0x110   : > { %v702_v41 = vadd.f32 %v2627_v25, %v701_v39  ;;  %734 = vst.msk [vmem:[#allocation2 + $0x18] sm:$0xff] %vm730_vm2, %v667_v36 }
 0x111   : > { %742 = vst.msk [vmem:[#allocation2 + $0x58] sm:$0xff] %vm730_vm2, %v707_v37  ;;  %733 = vst.msk [vmem:[#allocation2 + $0x10] sm:$0xff] %vm730_vm2, %v662_v40  ;;  %v2854_v42 = vpop.f32.mrb[4].mxu0 }
 0x112   : > { %741 = vst.msk [vmem:[#allocation2 + $0x50] sm:$0xff] %vm730_vm2, %v702_v41  ;;  %v2866_v43 = vpop.f32.mrb[4].mxu1  ;;  %v677_v44 = vadd.f32 %v2854_v42, %v2627_v25  ;;  %v671_v46 = vpop.f32.mrb[5].mxu0 }
 0x113   : > { %v717_v45 = vadd.f32 %v2866_v43, %v2627_v25  ;;  %v711_v47 = vpop.f32.mrb[5].mxu1  ;;  %v672_v48 = vadd.f32 %v2627_v25, %v671_v46 }
 0x114   : > { %v712_v49 = vadd.f32 %v2627_v25, %v711_v47  ;;  %736 = vst.msk [vmem:[#allocation2 + $0x28] sm:$0xff] %vm730_vm2, %v677_v44 }
 0x115   : > { %744 = vst.msk [vmem:[#allocation2 + $0x68] sm:$0xff] %vm730_vm2, %v717_v45  ;;  %735 = vst.msk [vmem:[#allocation2 + $0x20] sm:$0xff] %vm730_vm2, %v672_v48  ;;  %v2857_v50 = vpop.f32.mrb[6].mxu0 }
 0x116   : > { %743 = vst.msk [vmem:[#allocation2 + $0x60] sm:$0xff] %vm730_vm2, %v712_v49  ;;  %v2869_v51 = vpop.f32.mrb[6].mxu1  ;;  %v687_v52 = vadd.f32 %v2857_v50, %v2627_v25  ;;  %v681_v54 = vpop.f32.mrb[7].mxu0 }
 0x117   : > { %v727_v53 = vadd.f32 %v2869_v51, %v2627_v25  ;;  %v721_v55 = vpop.f32.mrb[7].mxu1  ;;  %v682_v56 = vadd.f32 %v2627_v25, %v681_v54 }
 0x118   : > { %v722_v57 = vadd.f32 %v2627_v25, %v721_v55  ;;  %738 = vst.msk [vmem:[#allocation2 + $0x38] sm:$0xff] %vm730_vm2, %v687_v52 }
 0x119   : > { %746 = vst.msk [vmem:[#allocation2 + $0x78] sm:$0xff] %vm730_vm2, %v727_v53  ;;  %737 = vst.msk [vmem:[#allocation2 + $0x30] sm:$0xff] %vm730_vm2, %v682_v56 }
 0x11a   : > { %745 = vst.msk [vmem:[#allocation2 + $0x70] sm:$0xff] %vm730_vm2, %v722_v57 }
 0x11b PF: > { %v812_v58 = vld [vmem:[%s3585_s19] sm:$0xff]  ;;  %v813_v59 = vld [vmem:[%s3585_s19 + $0x8] sm:$0xff]  ;;  %v814_v60 = vld [vmem:[%s3585_s19 + $0x10] sm:$0xff]  ;;  %vm823_vm4 = vcmask 261120   ;;  %vm1033_vm5 = vcmask 130048   ;;  %vm1595_vm7 = vcmask 7168  }
 0x11c   : > { %v3050_v61 = vpack.c.bf16 %v813_v59, %v812_v58  ;;  %v815_v62 = vld [vmem:[%s3585_s19 + $0x18] sm:$0xff]  ;;  %v796_v63 = vld [vmem:[%s3571_s0] sm:$0xff]  ;;  %v797_v1 = vld [vmem:[%s3571_s0 + $0x8] sm:$0xff]  ;;  %p1965_p1 = scmp.eq.s32.totalorder %s3404_s27, 1  ;;  %p2693_p2 = scmp.ne.s32.totalorder %s3404_s27, 1 }
 0x11d   : > { %v3054_v0 = vpack.c.bf16 %v815_v62, %v814_v60  ;;  %2878 = vmatprep.mubr.msk.f32.mxu0 %vm823_vm4, %v796_v63  ;;  %v798_v2 = vld [vmem:[%s3571_s0 + $0x10] sm:$0xff]  ;;  %v799_v3 = vld [vmem:[%s3571_s0 + $0x18] sm:$0xff]  ;;  %v800_v4 = vld [vmem:[%s3571_s0 + $0x20] sm:$0xff] }
 0x11e   : > { %3051 = vmatprep.subr.bf16.mxu0 %v3050_v61  ;;  %v801_v5 = vld [vmem:[%s3571_s0 + $0x28] sm:$0xff]  ;;  %v802_v6 = vld [vmem:[%s3571_s0 + $0x30] sm:$0xff]  ;;  %v803_v7 = vld [vmem:[%s3571_s0 + $0x38] sm:$0xff] }
 0x11f   : > { %3053 = vmatpush3.bf16.msra.mxu0 %v3050_v61  ;;  %v804_v8 = vld [vmem:[%s3571_s0 + $0x40] sm:$0xff]  ;;  %v805_v9 = vld [vmem:[%s3571_s0 + $0x48] sm:$0xff]  ;;  %v806_v10 = vld [vmem:[%s3571_s0 + $0x50] sm:$0xff] }
 0x120   : > { %3055 = vmatprep.subr.bf16.mxu0 %v3054_v0  ;;  %v807_v11 = vld [vmem:[%s3571_s0 + $0x58] sm:$0xff]  ;;  %v808_v12 = vld [vmem:[%s3571_s0 + $0x60] sm:$0xff]  ;;  %v809_v13 = vld [vmem:[%s3571_s0 + $0x68] sm:$0xff] }
 0x121   : > { %v810_v14 = vld [vmem:[%s3571_s0 + $0x70] sm:$0xff]  ;;  %v811_v15 = vld [vmem:[%s3571_s0 + $0x78] sm:$0xff]  ;;  %v1017_v16 = vld [vmem:[#allocation2] sm:$0xff]  ;;  %s3442_s0 = smov 112  }
 0x122   : > { %2934 = vmatprep.mubr.msk.f32.mxu1 %vm1033_vm5, %v1017_v16  ;;  %v2644_v17 = vld [vmem:[%s467_s23] ss:$0 sm:$0xff]  ;;  %vm3769_vm6 = vmpackc.low %vm1033_vm5, %vm1033_vm5  ;;  %v1031_v16 = vld [vmem:[#allocation2 + $0x70] sm:$0xff] }
 0x123   : > { %3057 = vmatpush3.bf16.msra.mxu0 %v3054_v0 }
 0x126   : > { %2879 = vmatmul.mubr.msk.f32.vlgmr.msra.gmra.mrb[0].mxu0 %vm823_vm4, %v797_v1 }
 0x127   : > { %2881 = vmatprep.mubr.msk.f32.mxu0 %vm823_vm4, %v798_v2 }
 0x12a   : > { %2882 = vmatmul.mubr.msk.f32.gmra.mrb[2].mxu0 %vm823_vm4, %v799_v3  ;;  %v1018_v3 = vld [vmem:[#allocation2 + $0x8] sm:$0xff] }
 0x12b   : > { %2884 = vmatprep.mubr.msk.f32.mxu0 %vm823_vm4, %v800_v4  ;;  %v1019_v4 = vld [vmem:[#allocation2 + $0x10] sm:$0xff] }
 0x12e   : > { %2885 = vmatmul.mubr.msk.f32.gmra.mrb[4].mxu0 %vm823_vm4, %v801_v5  ;;  %v1020_v5 = vld [vmem:[#allocation2 + $0x18] sm:$0xff] }
 0x12f   : > { %2887 = vmatprep.mubr.msk.f32.mxu0 %vm823_vm4, %v802_v6  ;;  %v1021_v6 = vld [vmem:[#allocation2 + $0x20] sm:$0xff] }
 0x132   : > { %2888 = vmatmul.mubr.msk.f32.gmra.mrb[6].mxu0 %vm823_vm4, %v803_v7  ;;  %v1022_v7 = vld [vmem:[#allocation2 + $0x28] sm:$0xff] }
 0x133   : > { %2890 = vmatprep.mubr.msk.f32.mxu0 %vm823_vm4, %v804_v8  ;;  %v1023_v8 = vld [vmem:[#allocation2 + $0x30] sm:$0xff] }
 0x136   : > { %2891 = vmatmul.mubr.msk.f32.gmra.mrb[8].mxu0 %vm823_vm4, %v805_v9  ;;  %v1024_v9 = vld [vmem:[#allocation2 + $0x38] sm:$0xff] }
 0x137   : > { %2893 = vmatprep.mubr.msk.f32.mxu0 %vm823_vm4, %v806_v10  ;;  %v1025_v10 = vld [vmem:[#allocation2 + $0x40] sm:$0xff] }
 0x13a   : > { %2894 = vmatmul.mubr.msk.f32.gmra.mrb[10].mxu0 %vm823_vm4, %v807_v11  ;;  %v1026_v11 = vld [vmem:[#allocation2 + $0x48] sm:$0xff] }
 0x13b   : > { %2896 = vmatprep.mubr.msk.f32.mxu0 %vm823_vm4, %v808_v12  ;;  %v1027_v12 = vld [vmem:[#allocation2 + $0x50] sm:$0xff] }
 0x13e   : > { %2897 = vmatmul.mubr.msk.f32.gmra.mrb[12].mxu0 %vm823_vm4, %v809_v13  ;;  %v1028_v13 = vld [vmem:[#allocation2 + $0x58] sm:$0xff] }
 0x13f   : > { %2899 = vmatprep.mubr.msk.f32.mxu0 %vm823_vm4, %v810_v14  ;;  %v1029_v14 = vld [vmem:[#allocation2 + $0x60] sm:$0xff] }
 0x142   : > { %2900 = vmatmul.mubr.msk.f32.gmra.mrb[14].mxu0 %vm823_vm4, %v811_v15  ;;  %v1030_v15 = vld [vmem:[#allocation2 + $0x68] sm:$0xff] }
 0x1f9   : > { %v2880_v18 = vpop.f32.mrb[0].mxu0 }
 0x1fa   : > { %v3763_v19 = vadd.f32 %v2880_v18, %v2644_v17  ;;  %v938_v20 = vpop.f32.mrb[1].mxu0 }
 0x1fb   : > { %v3765_v21 = vadd.f32 %v2644_v17, %v938_v20 }
 0x1fd   : > { %v3226_v23 = vpack.i.bf16 %v3763_v19, %v3765_v21  ;;  %v3058_v24 = vpack.c.bf16 %v3763_v19, %v3765_v21  ;;  %v2883_v25 = vpop.f32.mrb[2].mxu0  ;;  %v1275_v19 = vld [vmem:[#allocation3] sm:$0xff] }
 0x1fe   : > { %v3777_v26 = vadd.f32 %v2883_v25, %v2644_v17  ;;  %v948_v27 = vpop.f32.mrb[3].mxu0 }
 0x1ff   : > { %3060 = vmatprep.subr.msk.bf16.mxu1 %vm3769_vm6, %v3058_v24  ;;  %v3781_v28 = vadd.f32 %v2644_v17, %v948_v27 }
 0x200   : > { %3063 = vmatpush3.bf16.xpose.msk.msra.mxu1 %vm3769_vm6, %v3058_v24 }
 0x201   : > { %v3231_v29 = vpack.i.bf16 %v3777_v26, %v3781_v28  ;;  %v3064_v30 = vpack.c.bf16 %v3777_v26, %v3781_v28  ;;  %v2886_v31 = vpop.f32.mrb[4].mxu0  ;;  %v3956_v26 = vld [vmem:[#allocation3 + $0x18] sm:$0xff]  ;;  %v3958_v28 = vld [vmem:[#allocation3 + $0x8] sm:$0xff] }
 0x202   : > { %v3789_v32 = vadd.f32 %v2886_v31, %v2644_v17  ;;  %v958_v33 = vpop.f32.mrb[5].mxu0 }
 0x203   : > { %3066 = vmatprep.subr.msk.bf16.mxu1 %vm3769_vm6, %v3064_v30  ;;  %v3793_v34 = vadd.f32 %v2644_v17, %v958_v33 }
 0x205   : > { %v3236_v35 = vpack.i.bf16 %v3789_v32, %v3793_v34  ;;  %v3070_v36 = vpack.c.bf16 %v3789_v32, %v3793_v34  ;;  %v2889_v37 = vpop.f32.mrb[6].mxu0 }
 0x206   : > { %v3799_v38 = vadd.f32 %v2889_v37, %v2644_v17  ;;  %v968_v39 = vpop.f32.mrb[7].mxu0  ;;  %v3441_v37 = vmov 0  }
 0x207   : > { %v3801_v40 = vadd.f32 %v2644_v17, %v968_v39  ;;  %3261 = vset.pattern.permute.xlu0 %v3441_v37  ;;  %3262 = vset.pattern.permute.xlu1 %v3441_v37  ;;  %v4046_v37 = vld [vmem:[#allocation3 + $0x70] sm:$0xff] }
 0x208   : > { %3069 = vmatpush3.bf16.xpose.msk.msra.mxu1 %vm3769_vm6, %v3064_v30 }
 0x209   : > { %3072 = vmatprep.subr.msk.bf16.mxu1 %vm3769_vm6, %v3070_v36  ;;  %v3241_v41 = vpack.i.bf16 %v3799_v38, %v3801_v40  ;;  %v3076_v42 = vpack.c.bf16 %v3799_v38, %v3801_v40  ;;  %v2892_v43 = vpop.f32.mrb[8].mxu0  ;;  %v1277_v38 = vld [vmem:[#allocation3 + $0x10] sm:$0xff]  ;;  %v3969_v40 = vld [vmem:[#allocation3 + $0x20] sm:$0xff] }
 0x20a   : > { %v3811_v44 = vadd.f32 %v2892_v43, %v2644_v17  ;;  %v978_v45 = vpop.f32.mrb[9].mxu0 }
 0x20b   : > { %v3813_v46 = vadd.f32 %v2644_v17, %v978_v45 }
 0x20d   : > { %v3246_v47 = vpack.i.bf16 %v3811_v44, %v3813_v46  ;;  %v3082_v48 = vpack.c.bf16 %v3811_v44, %v3813_v46  ;;  %v2895_v49 = vpop.f32.mrb[10].mxu0 }
 0x20e   : > { %v3819_v50 = vadd.f32 %v2895_v49, %v2644_v17  ;;  %v988_v51 = vpop.f32.mrb[11].mxu0 }
 0x20f   : > { %v3821_v52 = vadd.f32 %v2644_v17, %v988_v51  ;;  %v3980_v51 = vld [vmem:[#allocation3 + $0x30] sm:$0xff] }
 0x210   : > { %3075 = vmatpush3.bf16.xpose.msk.msra.mxu1 %vm3769_vm6, %v3070_v36 }
 0x211   : > { %3078 = vmatprep.subr.msk.bf16.mxu1 %vm3769_vm6, %v3076_v42  ;;  %v3251_v53 = vpack.i.bf16 %v3819_v50, %v3821_v52  ;;  %v3088_v54 = vpack.c.bf16 %v3819_v50, %v3821_v52  ;;  %v2898_v55 = vpop.f32.mrb[12].mxu0  ;;  %v3977_v50 = vld [vmem:[#allocation3 + $0x28] sm:$0xff] }
 0x212   : > { %v3831_v56 = vadd.f32 %v2898_v55, %v2644_v17  ;;  %v998_v57 = vpop.f32.mrb[13].mxu0 }
 0x213   : > { %v3833_v58 = vadd.f32 %v2644_v17, %v998_v57  ;;  %v3996_v57 = vld [vmem:[#allocation3 + $0x40] sm:$0xff] }
 0x215   : > { %v3256_v59 = vpack.i.bf16 %v3831_v56, %v3833_v58  ;;  %v3094_v60 = vpack.c.bf16 %v3831_v56, %v3833_v58  ;;  %v2901_v61 = vpop.f32.mrb[14].mxu0  ;;  %v3991_v56 = vld [vmem:[#allocation3 + $0x38] sm:$0xff] }
 0x216   : > { %v3839_v62 = vadd.f32 %v2901_v61, %v2644_v17  ;;  %v1008_v63 = vpop.f32.mrb[15].mxu0 }
 0x217   : > { %v3841_v0 = vadd.f32 %v2644_v17, %v1008_v63  ;;  %v1032_v17 = vld [vmem:[#allocation2 + $0x78] sm:$0xff]  ;;  %v4007_v63 = vld [vmem:[#allocation3 + $0x48] sm:$0xff] }
 0x218   : > { %3081 = vmatpush3.bf16.xpose.msk.msra.mxu1 %vm3769_vm6, %v3076_v42 }
 0x219   : > { %3084 = vmatprep.subr.msk.bf16.mxu1 %vm3769_vm6, %v3082_v48  ;;  %v3263_v1 = vpack.i.bf16 %v3839_v62, %v3841_v0  ;;  %v3100_v2 = vpack.c.bf16 %v3839_v62, %v3841_v0 }
 0x220   : > { %3087 = vmatpush3.bf16.xpose.msk.msra.mxu1 %vm3769_vm6, %v3082_v48 }
 0x221   : > { %3090 = vmatprep.subr.msk.bf16.mxu1 %vm3769_vm6, %v3088_v54 }
 0x228   : > { %3093 = vmatpush3.bf16.xpose.msk.msra.mxu1 %vm3769_vm6, %v3088_v54 }
 0x229   : > { %3096 = vmatprep.subr.msk.bf16.mxu1 %vm3769_vm6, %v3094_v60 }
 0x230   : > { %3099 = vmatpush3.bf16.xpose.msk.msra.mxu1 %vm3769_vm6, %v3094_v60 }
 0x231   : > { %3102 = vmatprep.subr.msk.bf16.mxu1 %vm3769_vm6, %v3100_v2 }
 0x238   : > { %3105 = vmatpush3.bf16.xpose.msk.msra.mxu1 %vm3769_vm6, %v3100_v2  ;;  %v4012_v2 = vld [vmem:[#allocation3 + $0x50] sm:$0xff] }
 0x23f   : > { %2935 = vmatmul.mubr.msk.f32.vlgmr.msra.gmra.mrb[0].mxu1 %vm1033_vm5, %v1018_v3 }
 0x240   : > { %2937 = vmatprep.mubr.msk.f32.mxu1 %vm1033_vm5, %v1019_v4 }
 0x243   : > { %2938 = vmatmul.mubr.msk.f32.gmra.mrb[2].mxu1 %vm1033_vm5, %v1020_v5 }
 0x244   : > { %2940 = vmatprep.mubr.msk.f32.mxu1 %vm1033_vm5, %v1021_v6 }
 0x247   : > { %2941 = vmatmul.mubr.msk.f32.gmra.mrb[4].mxu1 %vm1033_vm5, %v1022_v7 }
 0x248   : > { %2943 = vmatprep.mubr.msk.f32.mxu1 %vm1033_vm5, %v1023_v8  ;;  %v4023_v8 = vld [vmem:[#allocation3 + $0x58] sm:$0xff] }
 0x24b   : > { %2944 = vmatmul.mubr.msk.f32.gmra.mrb[6].mxu1 %vm1033_vm5, %v1024_v9  ;;  %v4028_v9 = vld [vmem:[#allocation3 + $0x60] sm:$0xff] }
 0x24c   : > { %2946 = vmatprep.mubr.msk.f32.mxu1 %vm1033_vm5, %v1025_v10 }
 0x24f   : > { %2947 = vmatmul.mubr.msk.f32.gmra.mrb[8].mxu1 %vm1033_vm5, %v1026_v11 }
 0x250   : > { %2949 = vmatprep.mubr.msk.f32.mxu1 %vm1033_vm5, %v1027_v12 }
 0x253   : > { %2950 = vmatmul.mubr.msk.f32.gmra.mrb[10].mxu1 %vm1033_vm5, %v1028_v13 }
 0x254   : > { %2952 = vmatprep.mubr.msk.f32.mxu1 %vm1033_vm5, %v1029_v14 }
 0x257   : > { %2953 = vmatmul.mubr.msk.f32.gmra.mrb[12].mxu1 %vm1033_vm5, %v1030_v15 }
 0x258   : > { %2955 = vmatprep.mubr.msk.f32.mxu1 %vm1033_vm5, %v1031_v16 }
 0x25b   : > { %2956 = vmatmul.mubr.msk.f32.gmra.mrb[14].mxu1 %vm1033_vm5, %v1032_v17  ;;  %v4041_v17 = vld [vmem:[#allocation3 + $0x68] sm:$0xff] }
 0x312   : > { %v3880_v18 = vpop.f32.mrb[0].mxu1 }
 0x313   : > { %v3882_v20 = vpop.f32.mrb[1].mxu1 }
 0x314   : > { %1291 = vmax.xlane.f32.xlu0 %v3882_v20 }
 0x316   : > { %v3885_v22 = vpop.f32.mrb[2].mxu1 }
 0x317   : > { %1297 = vmax.xlane.f32.xlu1 %v3885_v22  ;;  %v3888_v24 = vpop.f32.mrb[3].mxu1 }
 0x318   : > { %1293 = vmax.xlane.f32.xlu0 %v3880_v18 }
 0x31a   : > { %v3891_v25 = vpop.f32.mrb[4].mxu1 }
 0x31b   : > { %1295 = vmax.xlane.f32.xlu1 %v3888_v24  ;;  %v3894_v27 = vpop.f32.mrb[5].mxu1 }
 0x31c   : > { %1299 = vmax.xlane.f32.xlu0 %v3894_v27 }
 0x31e   : > { %v3897_v30 = vpop.f32.mrb[6].mxu1 }
 0x31f   : > { %1301 = vmax.xlane.f32.xlu1 %v3891_v25  ;;  %v3900_v31 = vpop.f32.mrb[7].mxu1 }
 0x320   : > { %1303 = vmax.xlane.f32.xlu0 %v3900_v31 }
 0x322   : > { %v3903_v33 = vpop.f32.mrb[8].mxu1 }
 0x323   : > { %1305 = vmax.xlane.f32.xlu1 %v3897_v30  ;;  %v3906_v36 = vpop.f32.mrb[9].mxu1 }
 0x324   : > { %1307 = vmax.xlane.f32.xlu0 %v3906_v36 }
 0x326   : > { %v3909_v39 = vpop.f32.mrb[10].mxu1 }
 0x327   : > { %1309 = vmax.xlane.f32.xlu1 %v3903_v33  ;;  %v3912_v42 = vpop.f32.mrb[11].mxu1 }
 0x328   : > { %1311 = vmax.xlane.f32.xlu0 %v3912_v42 }
 0x32a   : > { %v3915_v43 = vpop.f32.mrb[12].mxu1 }
 0x32b   : > { %1313 = vmax.xlane.f32.xlu1 %v3909_v39  ;;  %v3918_v45 = vpop.f32.mrb[13].mxu1 }
 0x32c   : > { %1315 = vmax.xlane.f32.xlu0 %v3918_v45 }
 0x32e   : > { %v3921_v48 = vpop.f32.mrb[14].mxu1 }
 0x32f   : > { %1317 = vmax.xlane.f32.xlu1 %v3915_v43  ;;  %v3924_v49 = vpop.f32.mrb[15].mxu1 }
 0x330   : > { %1319 = vmax.xlane.f32.xlu0 %v3924_v49 }
 0x333   : > { %1321 = vmax.xlane.f32.xlu1 %v3921_v48 }
 0x344   : > { %3232 = vrot.lane.b32.xlu1 %v3231_v29, %s3442_s0 }
 0x346   : > { %3227 = vrot.lane.b32.xlu0 %v3226_v23, %s3442_s0 }
 0x348   : > { %3237 = vrot.lane.b32.xlu1 %v3236_v35, %s3442_s0 }
 0x34a   : > { %3252 = vrot.lane.b32.xlu0 %v3251_v53, %s3442_s0 }
 0x34c   : > { %3242 = vrot.lane.b32.xlu1 %v3241_v41, %s3442_s0 }
 0x350   : > { %3247 = vrot.lane.b32.xlu1 %v3246_v47, %s3442_s0 }
 0x354   : > { %3257 = vrot.lane.b32.xlu1 %v3256_v59, %s3442_s0 }
 0x3a1   : > { %v1292_v21 = vpop.xlane.xlu0 %1291 }
 0x3a2   : > { %v1323_v23 = vmax.f32 %v1275_v19, %v1292_v21 }
 0x3a4   : > { %1949 = vst.msk [vmem:[#allocation3] sm:$0xff] %vm1595_vm7, %v1323_v23  ;;  %v1298_v29 = vpop.xlane.xlu1 %1297  ;;  %1389 = vperm.xlu1 %3262, %v1323_v23   ;;  %v1339_v3 = vsub.f32 %v1275_v19, %v1323_v23 }
 0x3a5   : > { %v3962_v32 = vmax.f32 %v3956_v26, %v1298_v29  ;;  %v1294_v34 = vpop.xlane.xlu0 %1293 }
 0x3a6   : > { %v3965_v35 = vmax.f32 %v3958_v28, %v1294_v34  ;;  %v1355_v10 = vmul.f32 1.442695, %v1339_v3 }
 0x3a7   : > { %1952 = vst.msk [vmem:[#allocation3 + $0x18] sm:$0xff] %vm1595_vm7, %v3962_v32  ;;  %v1342_v19 = vsub.f32 %v3956_v26, %v3962_v32 }
 0x3a8   : > { %1950 = vst.msk [vmem:[#allocation3 + $0x8] sm:$0xff] %vm1595_vm7, %v3965_v35  ;;  %v1296_v41 = vpop.xlane.xlu1 %1295  ;;  %1394 = vperm.xlu0 %3261, %v3965_v35   ;;  %v1340_v13 = vsub.f32 %v3958_v28, %v3965_v35  ;;  %3268 = vpow2.f32 %v1355_v10 }
 0x3a9   : > { %v1325_v44 = vmax.f32 %v1277_v38, %v1296_v41  ;;  %v1300_v46 = vpop.xlane.xlu0 %1299  ;;  %v1361_v62 = vmul.f32 1.442695, %v1342_v19 }
 0x3aa   : > { %v3975_v47 = vmax.f32 %v3969_v40, %v1300_v46  ;;  %v1357_v28 = vmul.f32 1.442695, %v1340_v13 }
 0x3ab   : > { %1951 = vst.msk [vmem:[#allocation3 + $0x10] sm:$0xff] %vm1595_vm7, %v1325_v44  ;;  %1399 = vperm.xlu1 %3262, %v1325_v44   ;;  %v1341_v11 = vsub.f32 %v1277_v38, %v1325_v44 }
 0x3ac   : > { %1953 = vst.msk [vmem:[#allocation3 + $0x20] sm:$0xff] %vm1595_vm7, %v3975_v47  ;;  %v1302_v52 = vpop.xlane.xlu1 %1301  ;;  %1404 = vperm.xlu0 %3261, %v3962_v32   ;;  %v4064_v32 = vld [vmem:[#allocation3 + $0x78] sm:$0xff]  ;;  %v1343_v0 = vsub.f32 %v3969_v40, %v3975_v47 }
 0x3ad   : > { %v3986_v53 = vmax.f32 %v3977_v50, %v1302_v52  ;;  %v1304_v54 = vpop.xlane.xlu0 %1303  ;;  %v1359_v21 = vmul.f32 1.442695, %v1341_v11 }
 0x3ae   : > { %v3989_v55 = vmax.f32 %v3980_v51, %v1304_v54  ;;  %v1363_v54 = vmul.f32 1.442695, %v1343_v0 }
 0x3af   : > { %1954 = vst.msk [vmem:[#allocation3 + $0x28] sm:$0xff] %vm1595_vm7, %v3986_v53  ;;  %1414 = vperm.xlu1 %3262, %v3986_v53   ;;  %v1344_v29 = vsub.f32 %v3977_v50, %v3986_v53  ;;  %3270 = vpow2.f32 %v1359_v21 }
 0x3b0   : > { %1955 = vst.msk [vmem:[#allocation3 + $0x30] sm:$0xff] %vm1595_vm7, %v3989_v55  ;;  %v1306_v58 = vpop.xlane.xlu1 %1305  ;;  %1409 = vperm.xlu0 %3261, %v3975_v47   ;;  %3272 = vpow2.f32 %v1357_v28  ;;  %v1345_v47 = vsub.f32 %v3980_v51, %v3989_v55 }
 0x3b1   : > { %v4002_v59 = vmax.f32 %v3991_v56, %v1306_v58  ;;  %v1308_v60 = vpop.xlane.xlu0 %1307  ;;  %v1365_v41 = vmul.f32 1.442695, %v1344_v29  ;;  %3274 = vpow2.f32 %v1361_v62 }
 0x3b2   : > { %v4005_v61 = vmax.f32 %v3996_v57, %v1308_v60  ;;  %v4091_v3 = vpop.eup %3268 }
 0x3b3   : > { %1956 = vst.msk [vmem:[#allocation3 + $0x38] sm:$0xff] %vm1595_vm7, %v4002_v59  ;;  %1419 = vperm.xlu1 %3262, %v3989_v55   ;;  %v1346_v44 = vsub.f32 %v3991_v56, %v4002_v59  ;;  %3276 = vpow2.f32 %v1365_v41 }
 0x3b4   : > { %1957 = vst.msk [vmem:[#allocation3 + $0x40] sm:$0xff] %vm1595_vm7, %v4005_v61  ;;  %v1310_v4 = vpop.xlane.xlu1 %1309  ;;  %1424 = vperm.xlu0 %3261, %v4002_v59   ;;  %3278 = vpow2.f32 %v1363_v54 }
 0x3b5   : > { %v4018_v5 = vmax.f32 %v4007_v63, %v1310_v4  ;;  %v1312_v6 = vpop.xlane.xlu0 %1311  ;;  %v1369_v60 = vmul.f32 1.442695, %v1346_v44  ;;  %v1367_v4 = vmul.f32 1.442695, %v1345_v47 }
 0x3b6   : > { %v4021_v7 = vmax.f32 %v4012_v2, %v1312_v6 }
 0x3b7   : > { %1958 = vst.msk [vmem:[#allocation3 + $0x48] sm:$0xff] %vm1595_vm7, %v4018_v5  ;;  %1434 = vperm.xlu1 %3262, %v4018_v5   ;;  %v1348_v56 = vsub.f32 %v4007_v63, %v4018_v5  ;;  %v1347_v63 = vsub.f32 %v3996_v57, %v4005_v61  ;;  %3280 = vpow2.f32 %v1369_v60 }
 0x3b8   : > { %1959 = vst.msk [vmem:[#allocation3 + $0x50] sm:$0xff] %vm1595_vm7, %v4021_v7  ;;  %v1314_v12 = vpop.xlane.xlu1 %1313  ;;  %1429 = vperm.xlu0 %3261, %v4005_v61   ;;  %3282 = vpow2.f32 %v1367_v4  ;;  %v1349_v61 = vsub.f32 %v4012_v2, %v4021_v7 }
 0x3b9   : > { %v4036_v14 = vmax.f32 %v4023_v8, %v1314_v12  ;;  %v1316_v15 = vpop.xlane.xlu0 %1315  ;;  %v1373_v5 = vmul.f32 1.442695, %v1348_v56  ;;  %v1371_v57 = vmul.f32 1.442695, %v1347_v63 }
 0x3ba   : > { %v4039_v16 = vmax.f32 %v4028_v9, %v1316_v15  ;;  %v4099_v15 = vpop.eup %3270  ;;  %v1375_v2 = vmul.f32 1.442695, %v1349_v61 }
 0x3bb   : > { %1960 = vst.msk [vmem:[#allocation3 + $0x58] sm:$0xff] %vm1595_vm7, %v4036_v14  ;;  %1439 = vperm.xlu1 %3262, %v4021_v7   ;;  %v1350_v11 = vsub.f32 %v4023_v8, %v4036_v14  ;;  %v4101_v19 = vpop.eup %3272  ;;  %3284 = vpow2.f32 %v1373_v5 }
 0x3bc   : > { %1961 = vst.msk [vmem:[#allocation3 + $0x60] sm:$0xff] %vm1595_vm7, %v4039_v16  ;;  %v1318_v23 = vpop.xlane.xlu1 %1317  ;;  %3264 = vrot.lane.b32.xlu0 %v3263_v1, %s3442_s0  ;;  %3286 = vpow2.f32 %v1371_v57  ;;  %v1351_v7 = vsub.f32 %v4028_v9, %v4039_v16 }
 0x3bd   : > { %v4059_v34 = vmax.f32 %v4041_v17, %v1318_v23  ;;  %v1320_v35 = vpop.xlane.xlu0 %1319  ;;  %v1377_v8 = vmul.f32 1.442695, %v1350_v11 }
 0x3be   : > { %v4062_v26 = vmax.f32 %v4046_v37, %v1320_v35  ;;  %v4109_v35 = vpop.eup %3274  ;;  %v1379_v9 = vmul.f32 1.442695, %v1351_v7 }
 0x3bf   : > { %1962 = vst.msk [vmem:[#allocation3 + $0x68] sm:$0xff] %vm1595_vm7, %v4059_v34  ;;  %1449 = vperm.xlu1 %3262, %v4039_v16   ;;  %v4111_v62 = vpop.eup %3276  ;;  %3288 = vpow2.f32 %v1377_v8 }
 0x3c0   : > { %v1353_v1 = vsub.f32 %v4046_v37, %v4062_v26  ;;  %1963 = vst.msk [vmem:[#allocation3 + $0x70] sm:$0xff] %vm1595_vm7, %v4062_v26  ;;  %v1322_v38 = vpop.xlane.xlu1 %1321  ;;  %1444 = vperm.xlu0 %3261, %v4036_v14   ;;  %v1352_v14 = vsub.f32 %v4041_v17, %v4059_v34  ;;  %3290 = vpow2.f32 %v1375_v2 }
 0x3c1   : > { %v4079_v46 = vmax.f32 %v4064_v32, %v1322_v38  ;;  %v3228_v50 = vpop.permute.xlu0 %3227 }
 0x3c2   : > { %v3230_v52 = vunpack.i.h.bf16 %v3228_v50  ;;  %v3229_v40 = vunpack.i.l.bf16 %v3228_v50  ;;  %v1381_v17 = vmul.f32 1.442695, %v1352_v14  ;;  %v4117_v50 = vpop.eup %3278 }
 0x3c3   : > { %v1354_v53 = vsub.f32 %v4064_v32, %v4079_v46  ;;  %1964 = vst.msk [vmem:[#allocation3 + $0x78] sm:$0xff] %vm1595_vm7, %v4079_v46  ;;  %1459 = vperm.xlu1 %3262, %v4062_v26   ;;  %v4119_v47 = vpop.eup %3280 }
 0x3c4   : > { %v3106_v58 = vpack.c.bf16 %v3230_v52, %v3229_v40  ;;  %v3233_v59 = vpop.permute.xlu1 %3232  ;;  %1454 = vperm.xlu0 %3261, %v4059_v34   ;;  %v4123_v56 = vpop.eup %3282  ;;  %3292 = vpow2.f32 %v1381_v17 }
 0x3c5   : > { %v3235_v51 = vunpack.i.h.bf16 %v3233_v59  ;;  %v3234_v55 = vunpack.i.l.bf16 %v3233_v59  ;;  %v3253_v0 = vpop.permute.xlu0 %3252  ;;  %3294 = vpow2.f32 %v1379_v9 }
 0x3c6   : > { %3107 = vmatprep.subr.bf16.mxu0 %v3106_v58  ;;  %v3255_v52 = vunpack.i.h.bf16 %v3253_v0  ;;  %v3254_v40 = vunpack.i.l.bf16 %v3253_v0 }
 0x3c7   : > { %v3110_v6 = vpack.c.bf16 %v3235_v51, %v3234_v55  ;;  %1630 = vperm.xlu1 %3262, %v4091_v3   ;;  %3109 = vmatpush3.bf16.msra.mxu0 %v3106_v58  ;;  %v4125_v58 = vpop.eup %3284 }
 0x3c8   : > { %v3238_v10 = vpop.permute.xlu1 %3237  ;;  %1464 = vperm.xlu0 %3261, %v4079_v46   ;;  %v3126_v59 = vpack.c.bf16 %v3255_v52, %v3254_v40  ;;  %v4129_v55 = vpop.eup %3286 }
 0x3c9   : > { %v3240_v12 = vunpack.i.h.bf16 %v3238_v10  ;;  %v3239_v13 = vunpack.i.l.bf16 %v3238_v10  ;;  %3111 = vmatprep.subr.bf16.mxu0 %v3110_v6 }
 0x3cb   : > { %v3114_v21 = vpack.c.bf16 %v3240_v12, %v3239_v13  ;;  %1640 = vperm.xlu1 %3262, %v4099_v15   ;;  %3113 = vmatpush3.bf16.msra.mxu0 %v3110_v6  ;;  %v4131_v6 = vpop.eup %3288 }
 0x3cc   : > { %v3243_v23 = vpop.permute.xlu1 %3242  ;;  %1635 = vperm.xlu0 %3261, %v4101_v19   ;;  %v4135_v63 = vpop.eup %3290 }
 0x3cd   : > { %v3245_v28 = vunpack.i.h.bf16 %v3243_v23  ;;  %v3244_v29 = vunpack.i.l.bf16 %v3243_v23  ;;  %3115 = vmatprep.subr.bf16.mxu0 %v3114_v21 }
 0x3ce   : > { %v4137_v5 = vpop.eup %3292 }
 0x3cf   : > { %v3118_v38 = vpack.c.bf16 %v3245_v28, %v3244_v29  ;;  %1645 = vperm.xlu1 %3262, %v4109_v35   ;;  %3117 = vmatpush3.bf16.msra.mxu0 %v3114_v21  ;;  %v4141_v10 = vpop.eup %3294 }
 0x3d0   : > { %v3248_v41 = vpop.permute.xlu1 %3247  ;;  %1655 = vperm.xlu0 %3261, %v4111_v62  }
 0x3d1   : > { %v3250_v34 = vunpack.i.h.bf16 %v3248_v41  ;;  %v3249_v44 = vunpack.i.l.bf16 %v3248_v41  ;;  %3119 = vmatprep.subr.bf16.mxu0 %v3118_v38 }
 0x3d3   : > { %v3122_v54 = vpack.c.bf16 %v3250_v34, %v3249_v44  ;;  %1650 = vperm.xlu1 %3262, %v4117_v50   ;;  %3121 = vmatpush3.bf16.msra.mxu0 %v3118_v38 }
 0x3d4   : > { %v3258_v16 = vpop.permute.xlu1 %3257  ;;  %1665 = vperm.xlu0 %3261, %v4119_v47  }
 0x3d5   : > { %3123 = vmatprep.subr.bf16.mxu0 %v3122_v54  ;;  %v3260_v60 = vunpack.i.h.bf16 %v3258_v16  ;;  %v3259_v51 = vunpack.i.l.bf16 %v3258_v16 }
 0x3d7   : > { %1660 = vperm.xlu1 %3262, %v4123_v56   ;;  %3125 = vmatpush3.bf16.msra.mxu0 %v3122_v54  ;;  %v3130_v4 = vpack.c.bf16 %v3260_v60, %v3259_v51 }
 0x3d8   : > { %1675 = vperm.xlu0 %3261, %v4125_v58   ;;  %3127 = vmatprep.subr.bf16.mxu0 %v3126_v59 }
 0x3db   : > { %1670 = vperm.xlu1 %3262, %v4129_v55   ;;  %3129 = vmatpush3.bf16.msra.mxu0 %v3126_v59 }
 0x3dc   : > { %1685 = vperm.xlu0 %3261, %v4131_v6   ;;  %3131 = vmatprep.subr.bf16.mxu0 %v3130_v4 }
 0x3df   : > { %1680 = vperm.xlu1 %3262, %v4135_v63   ;;  %3133 = vmatpush3.bf16.msra.mxu0 %v3130_v4 }
 0x3e0   : > { %1695 = vperm.xlu0 %3261, %v4137_v5  }
 0x3e3   : > { %1690 = vperm.xlu1 %3262, %v4141_v10  }
 0x423   : > { %v1390_v11 = vpop.permute.xlu1 %1389 }
 0x424   : > { %v1467_v12 = vsub.f32 %v3882_v20, %v1390_v11 }
 0x426   : > { %v1483_v13 = vmul.f32 1.442695, %v1467_v12 }
 0x427   : > { %v1395_v21 = vpop.permute.xlu0 %1394 }
 0x428   : > { %3296 = vpow2.f32 %v1483_v13  ;;  %v1468_v57 = vsub.f32 %v3880_v18, %v1395_v21 }
 0x42a   : > { %v1485_v61 = vmul.f32 1.442695, %v1468_v57  ;;  %v1400_v23 = vpop.permute.xlu1 %1399 }
 0x42b   : > { %v1469_v8 = vsub.f32 %v3888_v24, %v1400_v23  ;;  %v1405_v14 = vpop.permute.xlu0 %1404 }
 0x42c   : > { %3298 = vpow2.f32 %v1485_v61  ;;  %v1470_v28 = vsub.f32 %v3885_v22, %v1405_v14 }
 0x42d   : > { %v1487_v38 = vmul.f32 1.442695, %v1469_v8 }
 0x42e   : > { %v1489_v29 = vmul.f32 1.442695, %v1470_v28  ;;  %v1415_v0 = vpop.permute.xlu1 %1414 }
 0x42f   : > { %v1410_v2 = vpop.permute.xlu0 %1409  ;;  %v1472_v20 = vsub.f32 %v3891_v25, %v1415_v0 }
 0x430   : > { %3300 = vpow2.f32 %v1489_v29  ;;  %v1471_v7 = vsub.f32 %v3894_v27, %v1410_v2 }
 0x431   : > { %3302 = vpow2.f32 %v1487_v38  ;;  %v1493_v44 = vmul.f32 1.442695, %v1472_v20 }
 0x432   : > { %v3297_v41 = vpop.eup %3296  ;;  %v1491_v17 = vmul.f32 1.442695, %v1471_v7  ;;  %v1420_v18 = vpop.permute.xlu1 %1419 }
 0x433   : > { %v1473_v34 = vsub.f32 %v3900_v31, %v1420_v18  ;;  %2990 = vmatprep.mubr.f32.mxu0 %v3297_v41  ;;  %1547 = vadd.xlane.f32.xlu1 %v3297_v41  ;;  %v1425_v24 = vpop.permute.xlu0 %1424 }
 0x434   : > { %3304 = vpow2.f32 %v1491_v17  ;;  %v1474_v22 = vsub.f32 %v3897_v30, %v1425_v24 }
 0x435   : > { %v1495_v52 = vmul.f32 1.442695, %v1473_v34 }
 0x436   : > { %v3299_v40 = vpop.eup %3298  ;;  %v1435_v54 = vpop.permute.xlu1 %1434  ;;  %v1497_v25 = vmul.f32 1.442695, %v1474_v22 }
 0x437   : > { %3306 = vpow2.f32 %v1495_v52  ;;  %1549 = vadd.xlane.f32.xlu0 %v3299_v40  ;;  %v1430_v27 = vpop.permute.xlu0 %1429  ;;  %v1476_v9 = vsub.f32 %v3903_v33, %v1435_v54  ;;  %v1385_v54 = vmul.f32 1.442695, %v1354_v53 }
 0x438   : > { %3308 = vpow2.f32 %v1493_v44  ;;  %v1475_v16 = vsub.f32 %v3906_v36, %v1430_v27 }
 0x439   : > { %3310 = vpow2.f32 %v1497_v25  ;;  %v1501_v4 = vmul.f32 1.442695, %v1476_v9 }
 0x43a   : > { %v3301_v31 = vpop.eup %3300  ;;  %v1499_v59 = vmul.f32 1.442695, %v1475_v16  ;;  %v1440_v60 = vpop.permute.xlu1 %1439 }
 0x43b   : > { %v1477_v51 = vsub.f32 %v3912_v42, %v1440_v60  ;;  %1553 = vadd.xlane.f32.xlu0 %v3301_v31  ;;  %v3265_v30 = vpop.permute.xlu0 %3264  ;;  %v3303_v13 = vpop.eup %3302 }
 0x43c   : > { %3312 = vpow2.f32 %v1499_v59  ;;  %v3267_v11 = vunpack.i.h.bf16 %v3265_v30  ;;  %v3266_v12 = vunpack.i.l.bf16 %v3265_v30 }
 0x43d   : > { %v1503_v21 = vmul.f32 1.442695, %v1477_v51 }
 0x43e   : > { %v3305_v57 = vpop.eup %3304  ;;  %v3134_v61 = vpack.c.bf16 %v3267_v11, %v3266_v12  ;;  %v1450_v23 = vpop.permute.xlu1 %1449 }
 0x43f   : > { %3314 = vpow2.f32 %v1503_v21  ;;  %v1479_v33 = vsub.f32 %v3918_v45, %v1450_v23  ;;  %1551 = vadd.xlane.f32.xlu0 %v3303_v13  ;;  %1555 = vadd.xlane.f32.xlu1 %v3305_v57  ;;  %v1445_v36 = vpop.permute.xlu0 %1444  ;;  %v1516_v21 = vld [vmem:[#allocation4 + $0x8] sm:$0xff] }
 0x440   : > { %3316 = vpow2.f32 %v1501_v4  ;;  %v1478_v42 = vsub.f32 %v3909_v39, %v1445_v36  ;;  %3135 = vmatprep.subr.bf16.mxu0 %v3134_v61  ;;  %v1515_v4 = vld [vmem:[#allocation4] sm:$0xff] }
 0x441   : > { %v3307_v8 = vpop.eup %3306  ;;  %v1507_v14 = vmul.f32 1.442695, %v1479_v33  ;;  %3137 = vmatpush3.bf16.msra.mxu0 %v3134_v61  ;;  %v1531_v11 = vmul.f32 %v4091_v3, %v1515_v4  ;;  %v1532_v61 = vmul.f32 %v4101_v19, %v1516_v21  ;;  %v1518_v33 = vld [vmem:[#allocation4 + $0x18] sm:$0xff]  ;;  %v1521_v19 = vld [vmem:[#allocation4 + $0x30] sm:$0xff] }
 0x442   : > { %v3309_v28 = vpop.eup %3308  ;;  %v1505_v29 = vmul.f32 1.442695, %v1478_v42  ;;  %v1460_v0 = vpop.permute.xlu1 %1459  ;;  %v1534_v42 = vmul.f32 %v4109_v35, %v1518_v33  ;;  %v1537_v35 = vmul.f32 %v4123_v56, %v1521_v19  ;;  %v1524_v56 = vld [vmem:[#allocation4 + $0x48] sm:$0xff]  ;;  %v1529_v33 = vld [vmem:[#allocation4 + $0x70] sm:$0xff]  ;;  %v1612_v19 = vld [vmem:[#allocation5] sm:$0xff] }
 0x443   : > { %3318 = vpow2.f32 %v1507_v14  ;;  %v1481_v38 = vsub.f32 %v3924_v49, %v1460_v0  ;;  %1557 = vadd.xlane.f32.xlu0 %v3309_v28  ;;  %1559 = vadd.xlane.f32.xlu1 %v3307_v8  ;;  %v1455_v2 = vpop.permute.xlu0 %1454  ;;  %v3311_v20 = vpop.eup %3310  ;;  %v1519_v14 = vld [vmem:[#allocation4 + $0x20] sm:$0xff] }
 0x444   : > { %3320 = vpow2.f32 %v1505_v29  ;;  %v1480_v45 = vsub.f32 %v3915_v43, %v1455_v2  ;;  %2991 = vmatmul.mubr.f32.vlgmr.msra.gmra.mrb[16].mxu0 %v3299_v40  ;;  %v1535_v29 = vmul.f32 %v4117_v50, %v1519_v14  ;;  %v1522_v50 = vld [vmem:[#allocation4 + $0x38] sm:$0xff] }
 0x445   : > { %v1511_v7 = vmul.f32 1.442695, %v1481_v38  ;;  %2993 = vmatprep.mubr.f32.mxu0 %v3303_v13 }
 0x446   : > { %v3313_v39 = vpop.eup %3312  ;;  %v1509_v41 = vmul.f32 1.442695, %v1480_v45  ;;  %v4172_v26 = vpop.permute.xlu1 %1630  ;;  %v1520_v45 = vld [vmem:[#allocation4 + $0x28] sm:$0xff] }
 0x447   : > { %3322 = vpow2.f32 %v1511_v7  ;;  %1561 = vadd.xlane.f32.xlu0 %v3311_v20  ;;  %1563 = vadd.xlane.f32.xlu1 %v3313_v39  ;;  %v1465_v17 = vpop.permute.xlu0 %1464 }
 0x448   : > { %3324 = vpow2.f32 %v1509_v41  ;;  %v1482_v18 = vsub.f32 %v3921_v48, %v1465_v17  ;;  %2994 = vmatmul.mubr.f32.gmra.mrb[18].mxu0 %v3301_v31  ;;  %v1383_v48 = vmul.f32 1.442695, %v1353_v1 }
 0x449   : > { %v3315_v49 = vpop.eup %3314  ;;  %2996 = vmatprep.mubr.f32.mxu0 %v3305_v57 }
 0x44a   : > { %v3317_v34 = vpop.eup %3316  ;;  %v1513_v24 = vmul.f32 1.442695, %v1482_v18  ;;  %v4174_v1 = vpop.permute.xlu1 %1640  ;;  %v1523_v18 = vld [vmem:[#allocation4 + $0x40] sm:$0xff] }
 0x44b   : > { %1565 = vadd.xlane.f32.xlu0 %v3317_v34  ;;  %1567 = vadd.xlane.f32.xlu1 %v3315_v49  ;;  %v4178_v9 = vpop.permute.xlu0 %1635 }
 0x44c   : > { %3326 = vpow2.f32 %v1513_v24  ;;  %2997 = vmatmul.mubr.f32.gmra.mrb[20].mxu0 %v3309_v28  ;;  %v1517_v28 = vld [vmem:[#allocation4 + $0x10] sm:$0xff]  ;;  %v1538_v24 = vmul.f32 %v4119_v47, %v1522_v50 }
 0x44d   : > { %v3319_v43 = vpop.eup %3318  ;;  %2999 = vmatprep.mubr.f32.mxu0 %v3307_v8  ;;  %3328 = vpow2.f32 %v1383_v48  ;;  %v1533_v0 = vmul.f32 %v4099_v15, %v1517_v28 }
 0x44e   : > { %v3321_v44 = vpop.eup %3320  ;;  %3330 = vpow2.f32 %v1385_v54  ;;  %v4176_v27 = vpop.permute.xlu1 %1645 }
 0x44f   : > { %1571 = vadd.xlane.f32.xlu1 %v3319_v43  ;;  %1569 = vadd.xlane.f32.xlu0 %v3321_v44  ;;  %v4182_v46 = vpop.permute.xlu0 %1655 }
 0x450   : > { %3000 = vmatmul.mubr.f32.gmra.mrb[22].mxu0 %v3311_v20 }
 0x451   : > { %v3323_v22 = vpop.eup %3322  ;;  %3002 = vmatprep.mubr.f32.mxu0 %v3313_v39  ;;  %v1536_v39 = vmul.f32 %v4111_v62, %v1520_v45  ;;  %v1615_v45 = vld [vmem:[#allocation5 + $0x18] sm:$0xff] }
 0x452   : > { %v3325_v52 = vpop.eup %3324  ;;  %v4180_v32 = vpop.permute.xlu1 %1650 }
 0x453   : > { %1575 = vadd.xlane.f32.xlu1 %v3323_v22  ;;  %1573 = vadd.xlane.f32.xlu0 %v3325_v52  ;;  %v4186_v16 = vpop.permute.xlu0 %1665 }
 0x454   : > { %3003 = vmatmul.mubr.f32.gmra.mrb[24].mxu0 %v3317_v34  ;;  %v1539_v34 = vmul.f32 %v4129_v55, %v1523_v18  ;;  %v1526_v55 = vld [vmem:[#allocation4 + $0x58] sm:$0xff]  ;;  %v1617_v18 = vld [vmem:[#allocation5 + $0x28] sm:$0xff] }
 0x455   : > { %3005 = vmatprep.mubr.f32.mxu0 %v3315_v49 }
 0x456   : > { %v3327_v40 = vpop.eup %3326  ;;  %v4184_v53 = vpop.permute.xlu1 %1660 }
 0x457   : > { %1577 = vadd.xlane.f32.xlu0 %v3327_v40  ;;  %v4166_v25 = vpop.eup %3328  ;;  %v4190_v59 = vpop.permute.xlu0 %1675 }
 0x458   : > { %3006 = vmatmul.mubr.f32.gmra.mrb[26].mxu0 %v3321_v44  ;;  %v4169_v37 = vpop.eup %3330 }
 0x459   : > { %3008 = vmatprep.mubr.f32.mxu0 %v3319_v43 }
 0x45a   : > { %v4188_v31 = vpop.permute.xlu1 %1670 }
 0x45b   : > { %v4195_v51 = vpop.permute.xlu0 %1685 }
 0x45c   : > { %3009 = vmatmul.mubr.f32.gmra.mrb[28].mxu0 %v3325_v52 }
 0x45d   : > { %3011 = vmatprep.mubr.f32.mxu0 %v3323_v22  ;;  %v1525_v22 = vld [vmem:[#allocation4 + $0x50] sm:$0xff] }
 0x45e   : > { %v4192_v60 = vpop.permute.xlu1 %1680  ;;  %v1541_v48 = vmul.f32 %v4135_v63, %v1525_v22  ;;  %v1528_v63 = vld [vmem:[#allocation4 + $0x68] sm:$0xff] }
 0x45f   : > { %v4200_v12 = vpop.permute.xlu0 %1695 }
 0x460   : > { %3012 = vmatmul.mubr.f32.gmra.mrb[30].mxu0 %v3327_v40  ;;  %v1540_v40 = vmul.f32 %v4125_v58, %v1524_v56 }
 0x462   : > { %v4197_v30 = vpop.permute.xlu1 %1690 }
 0x464   : > { %1700 = vperm.xlu1 %3262, %v4166_v25  }
 0x46d   : > { %1705 = vperm.xlu0 %3261, %v4169_v37  }
 0x4c0   : > { %v1548_v13 = vpop.xlane.xlu1 %1547 }
 0x4c1   : > { %v1579_v57 = vadd.f32 %v1548_v13, %v1531_v11  ;;  %v1527_v11 = vld [vmem:[#allocation4 + $0x60] sm:$0xff] }
 0x4c2   : > { %v1543_v21 = vmul.f32 %v4141_v10, %v1527_v11 }
 0x4c3   : > { %1596 = vst.msk [vmem:[#allocation4] sm:$0xff] %vm1595_vm7, %v1579_v57  ;;  %v1542_v57 = vmul.f32 %v4131_v6, %v1526_v55 }
 0x4c4   : > { %v1550_v23 = vpop.xlane.xlu0 %1549 }
 0x4c5   : > { %v1580_v36 = vadd.f32 %v1550_v23, %v1532_v61 }
 0x4c7   : > { %1597 = vst.msk [vmem:[#allocation4 + $0x8] sm:$0xff] %vm1595_vm7, %v1580_v36 }
 0x4c8   : > { %v1554_v8 = vpop.xlane.xlu0 %1553 }
 0x4c9   : > { %v1582_v3 = vadd.f32 %v1554_v8, %v1534_v42  ;;  %v1545_v42 = vmul.f32 %v4166_v25, %v1529_v33  ;;  %v1544_v8 = vmul.f32 %v4137_v5, %v1528_v63  ;;  %v1708_v5 = vmul.f32 %v4172_v26, %v1612_v19  ;;  %v1625_v33 = vld [vmem:[#allocation5 + $0x68] sm:$0xff]  ;;  %v1624_v63 = vld [vmem:[#allocation5 + $0x60] sm:$0xff] }
 0x4cb   : > { %1599 = vst.msk [vmem:[#allocation4 + $0x18] sm:$0xff] %vm1595_vm7, %v1582_v3  ;;  %v1530_v3 = vld [vmem:[#allocation4 + $0x78] sm:$0xff] }
 0x4cc   : > { %v1556_v38 = vpop.xlane.xlu1 %1555  ;;  %v1552_v2 = vpop.xlane.xlu0 %1551  ;;  %v1546_v6 = vmul.f32 %v4169_v37, %v1530_v3 }
 0x4cd   : > { %v1583_v20 = vadd.f32 %v1556_v38, %v1535_v29  ;;  %v1581_v7 = vadd.f32 %v1552_v2, %v1533_v0  ;;  %v1613_v2 = vld [vmem:[#allocation5 + $0x8] sm:$0xff] }
 0x4ce   : > { %v1709_v25 = vmul.f32 %v4178_v9, %v1613_v2 }
 0x4cf   : > { %1600 = vst.msk [vmem:[#allocation4 + $0x20] sm:$0xff] %vm1595_vm7, %v1583_v20  ;;  %1598 = vst.msk [vmem:[#allocation4 + $0x10] sm:$0xff] %vm1595_vm7, %v1581_v7  ;;  %v1614_v7 = vld [vmem:[#allocation5 + $0x10] sm:$0xff] }
 0x4d0   : > { %v1560_v41 = vpop.xlane.xlu1 %1559  ;;  %v1558_v17 = vpop.xlane.xlu0 %1557  ;;  %v1710_v37 = vmul.f32 %v4174_v1, %v1614_v7 }
 0x4d1   : > { %v1585_v49 = vadd.f32 %v1560_v41, %v1537_v35  ;;  %v1584_v15 = vadd.f32 %v1558_v17, %v1536_v39  ;;  %v1711_v17 = vmul.f32 %v4176_v27, %v1615_v45 }
 0x4d3   : > { %1602 = vst.msk [vmem:[#allocation4 + $0x30] sm:$0xff] %vm1595_vm7, %v1585_v49  ;;  %1601 = vst.msk [vmem:[#allocation4 + $0x28] sm:$0xff] %vm1595_vm7, %v1584_v15  ;;  %v1616_v49 = vld [vmem:[#allocation5 + $0x20] sm:$0xff] }
 0x4d4   : > { %v1564_v43 = vpop.xlane.xlu1 %1563  ;;  %v1562_v44 = vpop.xlane.xlu0 %1561 }
 0x4d5   : > { %v1587_v52 = vadd.f32 %v1564_v43, %v1539_v34  ;;  %v1586_v62 = vadd.f32 %v1562_v44, %v1538_v24  ;;  %v1713_v34 = vmul.f32 %v4182_v46, %v1617_v18  ;;  %v1712_v24 = vmul.f32 %v4180_v32, %v1616_v49  ;;  %v1619_v43 = vld [vmem:[#allocation5 + $0x38] sm:$0xff]  ;;  %v1618_v44 = vld [vmem:[#allocation5 + $0x30] sm:$0xff] }
 0x4d7   : > { %1604 = vst.msk [vmem:[#allocation4 + $0x40] sm:$0xff] %vm1595_vm7, %v1587_v52  ;;  %1603 = vst.msk [vmem:[#allocation4 + $0x38] sm:$0xff] %vm1595_vm7, %v1586_v62  ;;  %v1715_v52 = vmul.f32 %v4186_v16, %v1619_v43  ;;  %v1714_v62 = vmul.f32 %v4184_v53, %v1618_v44 }
 0x4d8   : > { %v1568_v54 = vpop.xlane.xlu1 %1567  ;;  %v1566_v4 = vpop.xlane.xlu0 %1565 }
 0x4d9   : > { %v1589_v13 = vadd.f32 %v1568_v54, %v1541_v48  ;;  %v1588_v47 = vadd.f32 %v1566_v4, %v1540_v40  ;;  %v1621_v48 = vld [vmem:[#allocation5 + $0x48] sm:$0xff]  ;;  %v1620_v40 = vld [vmem:[#allocation5 + $0x40] sm:$0xff] }
 0x4da   : > { %v1717_v11 = vmul.f32 %v4190_v59, %v1621_v48  ;;  %v1716_v55 = vmul.f32 %v4188_v31, %v1620_v40  ;;  %v1974_v44 = vld [vmem:[#allocation4 + $0x28] sm:$0xff] (!%p2693_p2) }
 0x4db   : > { %1606 = vst.msk [vmem:[#allocation4 + $0x50] sm:$0xff] %vm1595_vm7, %v1589_v13  ;;  %1605 = vst.msk [vmem:[#allocation4 + $0x48] sm:$0xff] %vm1595_vm7, %v1588_v47  ;;  %v1623_v13 = vld [vmem:[#allocation5 + $0x58] sm:$0xff]  ;;  %v1622_v47 = vld [vmem:[#allocation5 + $0x50] sm:$0xff] }
 0x4dc   : > { %v1572_v61 = vpop.xlane.xlu1 %1571  ;;  %v1570_v23 = vpop.xlane.xlu0 %1569 }
 0x4dd   : > { %v1591_v36 = vadd.f32 %v1572_v61, %v1543_v21  ;;  %v1590_v58 = vadd.f32 %v1570_v23, %v1542_v57  ;;  %v1719_v61 = vmul.f32 %v4195_v51, %v1623_v13  ;;  %v1718_v23 = vmul.f32 %v4192_v60, %v1622_v47  ;;  %v1626_v60 = vld [vmem:[#allocation5 + $0x70] sm:$0xff] }
 0x4de   : > { %v1977_v7 = vld [vmem:[#allocation4 + $0x40] sm:$0xff] (!%p2693_p2)  ;;  %v1976_v40 = vld [vmem:[#allocation4 + $0x38] sm:$0xff] (!%p2693_p2) }
 0x4df   : > { %1608 = vst.msk [vmem:[#allocation4 + $0x60] sm:$0xff] %vm1595_vm7, %v1591_v36  ;;  %1607 = vst.msk [vmem:[#allocation4 + $0x58] sm:$0xff] %vm1595_vm7, %v1590_v58 }
 0x4e0   : > { %v1576_v14 = vpop.xlane.xlu1 %1575  ;;  %v1574_v28 = vpop.xlane.xlu0 %1573 }
 0x4e1   : > { %v1593_v10 = vadd.f32 %v1576_v14, %v1545_v42  ;;  %v1592_v29 = vadd.f32 %v1574_v28, %v1544_v8  ;;  %v1721_v42 = vmul.f32 %v4200_v12, %v1625_v33  ;;  %v1720_v8 = vmul.f32 %v4197_v30, %v1624_v63  ;;  %v1627_v14 = vld [vmem:[#allocation5 + $0x78] sm:$0xff] }
 0x4e2   : > { %v1978_v45 = vld [vmem:[#allocation4 + $0x48] sm:$0xff] (!%p2693_p2) }
 0x4e3   : > { %1610 = vst.msk [vmem:[#allocation4 + $0x70] sm:$0xff] %vm1595_vm7, %v1593_v10  ;;  %1609 = vst.msk [vmem:[#allocation4 + $0x68] sm:$0xff] %vm1595_vm7, %v1592_v29 }
 0x4e4   : > { %v1578_v0 = vpop.xlane.xlu0 %1577  ;;  %v1701_v3 = vpop.permute.xlu1 %1700 }
 0x4e5   : > { %v1594_v38 = vadd.f32 %v1578_v0, %v1546_v6 }
 0x4e6   : > { %v1980_v18 = vld [vmem:[#allocation4 + $0x58] sm:$0xff] (!%p2693_p2) }
 0x4e7   : > { %1611 = vst.msk [vmem:[#allocation4 + $0x78] sm:$0xff] %vm1595_vm7, %v1594_v38  ;;  %v1722_v38 = vmul.f32 %v1701_v3, %v1626_v60 }
 0x4ea   : > { %v1982_v43 = vld [vmem:[#allocation4 + $0x68] sm:$0xff] (!%p2693_p2) }
 0x4ec   : > { %v1706_v51 = vpop.permute.xlu0 %1705 }
 0x4ed   : > { %v1723_v0 = vmul.f32 %v1706_v51, %v1627_v14 }
 0x4ee   : > { %v1984_v48 = vld [vmem:[#allocation4 + $0x78] sm:$0xff] (!%p2693_p2) }
 0x517   : > { %v2992_v20 = vpop.f32.mrb[16].mxu0 }
 0x518   : > { %v1918_v35 = vadd.f32 %v2992_v20, %v1709_v25  ;;  %v1838_v39 = vpop.f32.mrb[17].mxu0  ;;  %v1970_v25 = vld [vmem:[#allocation4 + $0x8] sm:$0xff] (!%p2693_p2)  ;;  %v3443_v20 = vmov (!%p2693_p2), 0  }
 0x519   : > { %v1917_v41 = vadd.f32 %v1838_v39, %v1708_v5  ;;  %v1969_v5 = vld [vmem:[#allocation4] sm:$0xff] (!%p2693_p2)  ;;  %3333 = vset.pattern.permute.xlu1 (!%p2693_p2), %v3443_v20  ;;  %3332 = vset.pattern.permute.xlu0 (!%p2693_p2), %v3443_v20  ;;  %3334 = vrcp.f32 (!%p2693_p2), %v1970_v25  ;;  %v1971_v39 = vld [vmem:[#allocation4 + $0x10] sm:$0xff] (!%p2693_p2) }
 0x51a   : > { %1934 = vst.msk [vmem:[#allocation5 + $0x8] sm:$0xff] %vm1033_vm5, %v1918_v35  ;;  %3336 = vrcp.f32 (!%p2693_p2), %v1969_v5  ;;  %v1979_v35 = vld [vmem:[#allocation4 + $0x50] sm:$0xff] (!%p2693_p2) }
 0x51b   : > { %1933 = vst.msk [vmem:[#allocation5] sm:$0xff] %vm1033_vm5, %v1917_v41  ;;  %v2995_v50 = vpop.f32.mrb[18].mxu0  ;;  %3338 = vrcp.f32 (!%p2693_p2), %v1978_v45  ;;  %v2145_v41 = vld [vmem:[%s3595_s15] sm:$0xff] (!%p2693_p2) }
 0x51c   : > { %v1920_v9 = vadd.f32 %v2995_v50, %v1711_v17  ;;  %v1848_v15 = vpop.f32.mrb[19].mxu0  ;;  %3340 = vrcp.f32 (!%p2693_p2), %v1977_v7  ;;  %v2146_v17 = vld [vmem:[%s3595_s15 + $0x8] sm:$0xff] (!%p2693_p2)  ;;  %v1972_v50 = vld [vmem:[#allocation4 + $0x18] sm:$0xff] (!%p2693_p2) }
 0x51d   : > { %v1919_v26 = vadd.f32 %v1848_v15, %v1710_v37  ;;  %v3138_v37 = vpack.c.bf16 (!%p2693_p2), %v2146_v17, %v2145_v41  ;;  %3342 = vrcp.f32 (!%p2693_p2), %v1979_v35  ;;  %v1981_v15 = vld [vmem:[#allocation4 + $0x60] sm:$0xff] (!%p2693_p2) }
 0x51e   : > { %1936 = vst.msk [vmem:[#allocation5 + $0x18] sm:$0xff] %vm1033_vm5, %v1920_v9  ;;  %3344 = vrcp.f32 (!%p2693_p2), %v1971_v39 }
 0x51f   : > { %1935 = vst.msk [vmem:[#allocation5 + $0x10] sm:$0xff] %vm1033_vm5, %v1919_v26  ;;  %v2998_v27 = vpop.f32.mrb[20].mxu0  ;;  %3139 = vmatprep.subr.bf16.mxu0 (!%p2693_p2), %v3138_v37  ;;  %3146 = vmatprep.subr.bf16.mxu1 (!%p2693_p2), %v3138_v37  ;;  %3346 = vrcp.f32 (!%p2693_p2), %v1980_v18 }
 0x520   : > { %v1922_v1 = vadd.f32 %v2998_v27, %v1713_v34  ;;  %v1858_v22 = vpop.f32.mrb[21].mxu0  ;;  %3141 = vmatpush3.bf16.msra.mxu0 (!%p2693_p2), %v3138_v37  ;;  %3147 = vmatpush3.bf16.msra.mxu1 (!%p2693_p2), %v3138_v37  ;;  %3348 = vrcp.f32 (!%p2693_p2), %v1972_v50  ;;  %v1973_v34 = vld [vmem:[#allocation4 + $0x20] sm:$0xff] (!%p2693_p2) }
 0x521   : > { %v1921_v56 = vadd.f32 %v1858_v22, %v1712_v24  ;;  %3350 = vrcp.f32 (!%p2693_p2), %v1981_v15  ;;  %v1983_v22 = vld [vmem:[#allocation4 + $0x70] sm:$0xff] (!%p2693_p2)  ;;  %v2018_v47 = vld [vmem:[#allocation5 + $0x8] sm:$0xff] (!%p2693_p2) }
 0x522   : > { %1938 = vst.msk [vmem:[#allocation5 + $0x28] sm:$0xff] %vm1033_vm5, %v1922_v1  ;;  %3352 = vrcp.f32 (!%p2693_p2), %v1973_v34 }
 0x523   : > { %1937 = vst.msk [vmem:[#allocation5 + $0x20] sm:$0xff] %vm1033_vm5, %v1921_v56  ;;  %v3001_v46 = vpop.f32.mrb[22].mxu0  ;;  %v3335_v49 = vpop.eup (!%p2693_p2), %3334  ;;  %3354 = vrcp.f32 (!%p2693_p2), %v1982_v43 }
 0x524   : > { %v1924_v32 = vadd.f32 %v3001_v46, %v1715_v52  ;;  %v1868_v54 = vpop.f32.mrb[23].mxu0  ;;  %v3337_v9 = vpop.eup (!%p2693_p2), %3336  ;;  %2040 = vperm.xlu1 (!%p2693_p2), %3333, %v3335_v49   ;;  %3356 = vrcp.f32 (!%p2693_p2), %v1974_v44  ;;  %v1975_v52 = vld [vmem:[#allocation4 + $0x30] sm:$0xff] (!%p2693_p2)  ;;  %v2130_v44 = vld [vmem:[#allocation6 + $0x8] sm:$0xff] (!%p2693_p2) }
 0x525   : > { %v1923_v4 = vadd.f32 %v1868_v54, %v1714_v62  ;;  %v3339_v26 = vpop.eup (!%p2693_p2), %3338  ;;  %2035 = vperm.xlu0 (!%p2693_p2), %3332, %v3337_v9   ;;  %3358 = vrcp.f32 (!%p2693_p2), %v1983_v22 }
 0x526   : > { %1940 = vst.msk [vmem:[#allocation5 + $0x38] sm:$0xff] %vm1033_vm5, %v1924_v32  ;;  %v3341_v24 = vpop.eup (!%p2693_p2), %3340  ;;  %3360 = vrcp.f32 (!%p2693_p2), %v1975_v52 }
 0x527   : > { %1939 = vst.msk [vmem:[#allocation5 + $0x30] sm:$0xff] %vm1033_vm5, %v1923_v4  ;;  %v3004_v16 = vpop.f32.mrb[24].mxu0  ;;  %v3343_v27 = vpop.eup (!%p2693_p2), %3342  ;;  %3362 = vrcp.f32 (!%p2693_p2), %v1984_v48  ;;  %v2138_v48 = vld [vmem:[#allocation6 + $0x48] sm:$0xff] (!%p2693_p2) }
 0x528   : > { %v1926_v53 = vadd.f32 %v3004_v16, %v1717_v11  ;;  %v1878_v21 = vpop.f32.mrb[25].mxu0  ;;  %2080 = vperm.xlu1 (!%p2693_p2), %3333, %v3339_v26   ;;  %v3345_v1 = vpop.eup (!%p2693_p2), %3344  ;;  %3364 = vrcp.f32 (!%p2693_p2), %v1976_v40 }
 0x529   : > { %v1925_v57 = vadd.f32 %v1878_v21, %v1716_v55  ;;  %2075 = vperm.xlu0 (!%p2693_p2), %3332, %v3341_v24   ;;  %v3347_v56 = vpop.eup (!%p2693_p2), %3346  ;;  %v2022_v20 = vld [vmem:[#allocation5 + $0x28] sm:$0xff] (!%p2693_p2) }
 0x52a   : > { %1942 = vst.msk [vmem:[#allocation5 + $0x48] sm:$0xff] %vm1033_vm5, %v1926_v53  ;;  %v3349_v62 = vpop.eup (!%p2693_p2), %3348  ;;  %v2017_v53 = vld [vmem:[#allocation5] sm:$0xff] (!%p2693_p2) }
 0x52b   : > { %1941 = vst.msk [vmem:[#allocation5 + $0x40] sm:$0xff] %vm1033_vm5, %v1925_v57  ;;  %v3007_v59 = vpop.f32.mrb[26].mxu0  ;;  %v3351_v46 = vpop.eup (!%p2693_p2), %3350 }
 0x52c   : > { %v1928_v31 = vadd.f32 %v3007_v59, %v1719_v61  ;;  %v1888_v36 = vpop.f32.mrb[27].mxu0  ;;  %2085 = vperm.xlu1 (!%p2693_p2), %3333, %v3343_v27   ;;  %v3353_v32 = vpop.eup (!%p2693_p2), %3352 }
 0x52d   : > { %v1927_v58 = vadd.f32 %v1888_v36, %v1718_v23  ;;  %2045 = vperm.xlu0 (!%p2693_p2), %3332, %v3345_v1   ;;  %v3355_v54 = vpop.eup (!%p2693_p2), %3354  ;;  %v2024_v26 = vld [vmem:[#allocation5 + $0x38] sm:$0xff] (!%p2693_p2)  ;;  %v2129_v1 = vld [vmem:[#allocation6] sm:$0xff] (!%p2693_p2) }
 0x52e   : > { %1944 = vst.msk [vmem:[#allocation5 + $0x58] sm:$0xff] %vm1033_vm5, %v1928_v31  ;;  %v3357_v4 = vpop.eup (!%p2693_p2), %3356  ;;  %v2023_v37 = vld [vmem:[#allocation5 + $0x30] sm:$0xff] (!%p2693_p2) }
 0x52f   : > { %1943 = vst.msk [vmem:[#allocation5 + $0x50] sm:$0xff] %vm1033_vm5, %v1927_v58  ;;  %v3010_v28 = vpop.f32.mrb[28].mxu0  ;;  %v3359_v11 = vpop.eup (!%p2693_p2), %3358 }
 0x530   : > { %v1930_v10 = vadd.f32 %v3010_v28, %v1721_v42  ;;  %v1898_v29 = vpop.f32.mrb[29].mxu0  ;;  %2090 = vperm.xlu1 (!%p2693_p2), %3333, %v3347_v56   ;;  %v3361_v55 = vpop.eup (!%p2693_p2), %3360 }
 0x531   : > { %v1929_v6 = vadd.f32 %v1898_v29, %v1720_v8  ;;  %1968 = sbr.rel (%p2693_p2) target bundleno = 1691 (0x69b), region = 64  ;;  %2050 = vperm.xlu0 (!%p2693_p2), %3332, %v3349_v62   ;;  %v3363_v13 = vpop.eup (!%p2693_p2), %3362  ;;  %v2026_v33 = vld [vmem:[#allocation5 + $0x48] sm:$0xff] (!%p2693_p2)  ;;  %v2019_v8 = vld [vmem:[#allocation5 + $0x10] sm:$0xff] (!%p2693_p2) }
 0x532   : > { %1946 = vst.msk [vmem:[#allocation5 + $0x68] sm:$0xff] %vm1033_vm5, %v1930_v10  ;;  %v3365_v16 = vpop.eup (!%p2693_p2), %3364  ;;  %v2025_v59 = vld [vmem:[#allocation5 + $0x40] sm:$0xff] (!%p2693_p2)  ;;  %v2020_v10 = vld [vmem:[#allocation5 + $0x18] sm:$0xff] (!%p2693_p2) }
 0x533   : > { %1945 = vst.msk [vmem:[#allocation5 + $0x60] sm:$0xff] %vm1033_vm5, %v1929_v6  ;;  %v3013_v12 = vpop.f32.mrb[30].mxu0 }
 0x534   : > { %v1932_v2 = vadd.f32 %v3013_v12, %v1723_v0  ;;  %v1908_v19 = vpop.f32.mrb[31].mxu0  ;;  %2095 = vperm.xlu1 (!%p2693_p2), %3333, %v3351_v46   ;;  %v2137_v46 = vld [vmem:[#allocation6 + $0x40] sm:$0xff] (!%p2693_p2) }
 0x535   : > { %v1931_v30 = vadd.f32 %v1908_v19, %v1722_v38  ;;  %2055 = vperm.xlu0 (!%p2693_p2), %3332, %v3353_v32   ;;  %v2028_v3 = vld [vmem:[#allocation5 + $0x58] sm:$0xff] (!%p2693_p2) }
 0x536   : > { %1948 = vst.msk [vmem:[#allocation5 + $0x78] sm:$0xff] %vm1033_vm5, %v1932_v2  ;;  %v2027_v42 = vld [vmem:[#allocation5 + $0x50] sm:$0xff] (!%p2693_p2)  ;;  %v2021_v2 = vld [vmem:[#allocation5 + $0x20] sm:$0xff] (!%p2693_p2) }
 0x537   : > { %1947 = vst.msk [vmem:[#allocation5 + $0x70] sm:$0xff] %vm1033_vm5, %v1931_v30 }
 0x538   : > { %2100 = vperm.xlu1 %3333, %v3355_v54  }
 0x539   : > { %2060 = vperm.xlu0 %3332, %v3357_v4   ;;  %v2030_v45 = vld [vmem:[#allocation5 + $0x68] sm:$0xff] }
 0x53a   : > { %v2029_v12 = vld [vmem:[#allocation5 + $0x60] sm:$0xff] }
 0x53c   : > { %2105 = vperm.xlu1 %3333, %v3359_v11   ;;  %v2140_v11 = vld [vmem:[#allocation6 + $0x58] sm:$0xff] }
 0x53d   : > { %2065 = vperm.xlu0 %3332, %v3361_v55   ;;  %v2032_v15 = vld [vmem:[#allocation5 + $0x78] sm:$0xff] }
 0x53e   : > { %v2031_v17 = vld [vmem:[#allocation5 + $0x70] sm:$0xff]  ;;  %v2132_v55 = vld [vmem:[#allocation6 + $0x18] sm:$0xff] }
 0x540   : > { %2110 = vperm.xlu1 %3333, %v3363_v13   ;;  %v2139_v13 = vld [vmem:[#allocation6 + $0x50] sm:$0xff] }
 0x541   : > { %2070 = vperm.xlu0 %3332, %v3365_v16  }
 0x5a3   : > { %v2041_v21 = vpop.permute.xlu1 %2040 }
 0x5a4   : > { %v2114_v57 = vmul.f32 %v2041_v21, %v2018_v47  ;;  %v2036_v61 = vpop.permute.xlu0 %2035  ;;  %v2131_v47 = vld [vmem:[#allocation6 + $0x10] sm:$0xff] }
 0x5a5   : > { %v2113_v23 = vmul.f32 %v2036_v61, %v2017_v53 }
 0x5a7   : > { %3018 = vmatprep.mubr.msk.f32.mxu0 %vm1033_vm5, %v2113_v23  ;;  %v2081_v63 = vpop.permute.xlu1 %2080 }
 0x5a8   : > { %v2122_v31 = vmul.f32 %v2081_v63, %v2026_v33  ;;  %3019 = vmatmul.mubr.msk.f32.vlgmr.msra.gmra.mrb[0].mxu0 %vm1033_vm5, %v2114_v57  ;;  %v2076_v36 = vpop.permute.xlu0 %2075  ;;  %v2142_v63 = vld [vmem:[#allocation6 + $0x68] sm:$0xff] }
 0x5a9   : > { %v2121_v58 = vmul.f32 %v2076_v36, %v2025_v59  ;;  %v2141_v36 = vld [vmem:[#allocation6 + $0x60] sm:$0xff] }
 0x5ab   : > { %3030 = vmatprep.mubr.msk.f32.mxu1 %vm1033_vm5, %v2121_v58  ;;  %v2086_v14 = vpop.permute.xlu1 %2085 }
 0x5ac   : > { %v2123_v51 = vmul.f32 %v2086_v14, %v2027_v42  ;;  %3031 = vmatmul.mubr.msk.f32.vlgmr.msra.gmra.mrb[0].mxu1 %vm1033_vm5, %v2122_v31  ;;  %v2046_v28 = vpop.permute.xlu0 %2045  ;;  %v2134_v31 = vld [vmem:[#allocation6 + $0x28] sm:$0xff]  ;;  %v2133_v42 = vld [vmem:[#allocation6 + $0x20] sm:$0xff] }
 0x5ad   : > { %v2115_v60 = vmul.f32 %v2046_v28, %v2019_v8 }
 0x5ae   : > { %3033 = vmatprep.mubr.msk.f32.mxu1 %vm1033_vm5, %v2123_v51 }
 0x5af   : > { %3021 = vmatprep.mubr.msk.f32.mxu0 %vm1033_vm5, %v2115_v60  ;;  %v2091_v29 = vpop.permute.xlu1 %2090 }
 0x5b0   : > { %v2124_v6 = vmul.f32 %v2091_v29, %v2028_v3  ;;  %v2051_v0 = vpop.permute.xlu0 %2050  ;;  %v2144_v29 = vld [vmem:[#allocation6 + $0x78] sm:$0xff] }
 0x5b1   : > { %v2116_v38 = vmul.f32 %v2051_v0, %v2020_v10  ;;  %v2143_v0 = vld [vmem:[#allocation6 + $0x70] sm:$0xff] }
 0x5b2   : > { %3034 = vmatmul.mubr.msk.f32.gmra.mrb[2].mxu1 %vm1033_vm5, %v2124_v6  ;;  %v2136_v6 = vld [vmem:[#allocation6 + $0x38] sm:$0xff] }
 0x5b3   : > { %3022 = vmatmul.mubr.msk.f32.gmra.mrb[2].mxu0 %vm1033_vm5, %v2116_v38  ;;  %v2096_v19 = vpop.permute.xlu1 %2095 }
 0x5b4   : > { %v2125_v30 = vmul.f32 %v2096_v19, %v2029_v12  ;;  %v2056_v25 = vpop.permute.xlu0 %2055  ;;  %v2135_v12 = vld [vmem:[#allocation6 + $0x30] sm:$0xff] }
 0x5b5   : > { %v2117_v5 = vmul.f32 %v2056_v25, %v2021_v2 }
 0x5b6   : > { %3036 = vmatprep.mubr.msk.f32.mxu1 %vm1033_vm5, %v2125_v30 }
 0x5b7   : > { %3024 = vmatprep.mubr.msk.f32.mxu0 %vm1033_vm5, %v2117_v5  ;;  %v2101_v7 = vpop.permute.xlu1 %2100 }
 0x5b8   : > { %v2126_v35 = vmul.f32 %v2101_v7, %v2030_v45  ;;  %v2061_v39 = vpop.permute.xlu0 %2060 }
 0x5b9   : > { %v2118_v41 = vmul.f32 %v2061_v39, %v2022_v20 }
 0x5ba   : > { %3037 = vmatmul.mubr.msk.f32.gmra.mrb[4].mxu1 %vm1033_vm5, %v2126_v35 }
 0x5bb   : > { %3025 = vmatmul.mubr.msk.f32.gmra.mrb[4].mxu0 %vm1033_vm5, %v2118_v41  ;;  %v2106_v18 = vpop.permute.xlu1 %2105 }
 0x5bc   : > { %v2127_v50 = vmul.f32 %v2106_v18, %v2031_v17  ;;  %v2066_v49 = vpop.permute.xlu0 %2065 }
 0x5bd   : > { %v2119_v9 = vmul.f32 %v2066_v49, %v2023_v37 }
 0x5be   : > { %3039 = vmatprep.mubr.msk.f32.mxu1 %vm1033_vm5, %v2127_v50 }
 0x5bf   : > { %3027 = vmatprep.mubr.msk.f32.mxu0 %vm1033_vm5, %v2119_v9  ;;  %v2111_v34 = vpop.permute.xlu1 %2110 }
 0x5c0   : > { %v2128_v24 = vmul.f32 %v2111_v34, %v2032_v15  ;;  %v2071_v43 = vpop.permute.xlu0 %2070 }
 0x5c1   : > { %v2120_v27 = vmul.f32 %v2071_v43, %v2024_v26 }
 0x5c2   : > { %3040 = vmatmul.mubr.msk.f32.gmra.mrb[6].mxu1 %vm1033_vm5, %v2128_v24 }
 0x5c3   : > { %3028 = vmatmul.mubr.msk.f32.gmra.mrb[6].mxu0 %vm1033_vm5, %v2120_v27 }
 0x67b   : > { %v3020_v22 = vpop.f32.mrb[0].mxu0 }
 0x67c   : > { %v2341_v56 = vadd.f32 %v3020_v22, %v2130_v44  ;;  %v2261_v52 = vpop.f32.mrb[1].mxu0 }
 0x67d   : > { %v2340_v62 = vadd.f32 %v2261_v52, %v2129_v1 }
 0x67e   : > { %2357 = vst.msk [vmem:[#allocation6 + $0x8] sm:$0xff] %vm823_vm4, %v2341_v56 }
 0x67f   : > { %2356 = vst.msk [vmem:[#allocation6] sm:$0xff] %vm823_vm4, %v2340_v62  ;;  %v3032_v40 = vpop.f32.mrb[0].mxu1 }
 0x680   : > { %v2349_v32 = vadd.f32 %v3032_v40, %v2138_v48  ;;  %v2301_v54 = vpop.f32.mrb[1].mxu1 }
 0x681   : > { %v2348_v4 = vadd.f32 %v2301_v54, %v2137_v46 }
 0x682   : > { %2365 = vst.msk [vmem:[#allocation6 + $0x48] sm:$0xff] %vm823_vm4, %v2349_v32 }
 0x683   : > { %2364 = vst.msk [vmem:[#allocation6 + $0x40] sm:$0xff] %vm823_vm4, %v2348_v4 }
 0x685   : > { %v3035_v16 = vpop.f32.mrb[2].mxu1 }
 0x686   : > { %v3023_v53 = vpop.f32.mrb[2].mxu0  ;;  %v2351_v21 = vadd.f32 %v3035_v16, %v2140_v11  ;;  %v2311_v57 = vpop.f32.mrb[3].mxu1 }
 0x687   : > { %v2343_v61 = vadd.f32 %v3023_v53, %v2132_v55  ;;  %v2271_v23 = vpop.f32.mrb[3].mxu0  ;;  %v2350_v33 = vadd.f32 %v2311_v57, %v2139_v13 }
 0x688   : > { %2367 = vst.msk [vmem:[#allocation6 + $0x58] sm:$0xff] %vm823_vm4, %v2351_v21  ;;  %v2342_v59 = vadd.f32 %v2271_v23, %v2131_v47 }
 0x689   : > { %2359 = vst.msk [vmem:[#allocation6 + $0x18] sm:$0xff] %vm823_vm4, %v2343_v61  ;;  %2366 = vst.msk [vmem:[#allocation6 + $0x50] sm:$0xff] %vm823_vm4, %v2350_v33 }
 0x68a   : > { %2358 = vst.msk [vmem:[#allocation6 + $0x10] sm:$0xff] %vm823_vm4, %v2342_v59 }
 0x68d   : > { %v3038_v58 = vpop.f32.mrb[4].mxu1 }
 0x68e   : > { %v3026_v8 = vpop.f32.mrb[4].mxu0  ;;  %v2353_v14 = vadd.f32 %v3038_v58, %v2142_v63  ;;  %v2321_v51 = vpop.f32.mrb[5].mxu1 }
 0x68f   : > { %v2345_v28 = vadd.f32 %v3026_v8, %v2134_v31  ;;  %v2281_v60 = vpop.f32.mrb[5].mxu0  ;;  %v2352_v3 = vadd.f32 %v2321_v51, %v2141_v36 }
 0x690   : > { %2369 = vst.msk [vmem:[#allocation6 + $0x68] sm:$0xff] %vm823_vm4, %v2353_v14  ;;  %v2344_v10 = vadd.f32 %v2281_v60, %v2133_v42 }
 0x691   : > { %2361 = vst.msk [vmem:[#allocation6 + $0x28] sm:$0xff] %vm823_vm4, %v2345_v28  ;;  %2368 = vst.msk [vmem:[#allocation6 + $0x60] sm:$0xff] %vm823_vm4, %v2352_v3 }
 0x692   : > { %2360 = vst.msk [vmem:[#allocation6 + $0x20] sm:$0xff] %vm823_vm4, %v2344_v10 }
 0x695   : > { %v3041_v38 = vpop.f32.mrb[6].mxu1 }
 0x696   : > { %v3029_v2 = vpop.f32.mrb[6].mxu0  ;;  %v2355_v19 = vadd.f32 %v3041_v38, %v2144_v29  ;;  %v2331_v30 = vpop.f32.mrb[7].mxu1 }
 0x697   : > { %v2347_v25 = vadd.f32 %v3029_v2, %v2136_v6  ;;  %v2291_v5 = vpop.f32.mrb[7].mxu0  ;;  %v2354_v45 = vadd.f32 %v2331_v30, %v2143_v0 }
 0x698   : > { %2371 = vst.msk [vmem:[#allocation6 + $0x78] sm:$0xff] %vm823_vm4, %v2355_v19  ;;  %v2346_v20 = vadd.f32 %v2291_v5, %v2135_v12 }
 0x699   : > { %2363 = vst.msk [vmem:[#allocation6 + $0x38] sm:$0xff] %vm823_vm4, %v2347_v25  ;;  %2370 = vst.msk [vmem:[#allocation6 + $0x70] sm:$0xff] %vm823_vm4, %v2354_v45 }
 0x69a   : > { %2362 = vst.msk [vmem:[#allocation6 + $0x30] sm:$0xff] %vm823_vm4, %v2346_v20 }
 0x69b PF: > { %p2372_p3 = scmp.eq.s32.totalorder %s3408_s28, 3 }
 0x69d   : > { %p2373_p4 = pnand %p2372_p3, %p1965_p1 }
 0x69e   : > { %v2377_v7 = vld [vmem:[#allocation6] sm:$0xff] (!%p2373_p4)  ;;  %v2378_v39 = vld [vmem:[#allocation6 + $0x8] sm:$0xff] (!%p2373_p4)  ;;  %v2379_v37 = vld [vmem:[#allocation6 + $0x10] sm:$0xff] (!%p2373_p4) }
 0x69f   : > { %2376 = sbr.rel (%p2373_p4) target bundleno = 1706 (0x6aa), region = 68  ;;  %v2710_v35 = vld [vmem:[%s4370_s7] ss:$0 sm:$0xff] (!%p2373_p4)  ;;  %v2380_v18 = vld [vmem:[#allocation6 + $0x18] sm:$0xff] (!%p2373_p4)  ;;  %v2382_v26 = vld [vmem:[#allocation6 + $0x28] sm:$0xff] (!%p2373_p4) }
 0x6a0   : > { %v2400_v41 = vadd.f32 (!%p2373_p4), %v2710_v35, %v2377_v7  ;;  %v2401_v17 = vadd.f32 (!%p2373_p4), %v2710_v35, %v2378_v39  ;;  %v2381_v50 = vld [vmem:[#allocation6 + $0x20] sm:$0xff] (!%p2373_p4)  ;;  %v2402_v49 = vadd.f32 (!%p2373_p4), %v2710_v35, %v2379_v37  ;;  %v2403_v9 = vadd.f32 (!%p2373_p4), %v2710_v35, %v2380_v18  ;;  %v2384_v24 = vld [vmem:[#allocation6 + $0x38] sm:$0xff] (!%p2373_p4)  ;;  %v2386_v22 = vld [vmem:[#allocation6 + $0x48] sm:$0xff] (!%p2373_p4) }
 0x6a1   : > { %v2404_v15 = vadd.f32 (!%p2373_p4), %v2710_v35, %v2381_v50  ;;  %v2383_v34 = vld [vmem:[#allocation6 + $0x30] sm:$0xff] (!%p2373_p4)  ;;  %v2405_v43 = vadd.f32 (!%p2373_p4), %v2710_v35, %v2382_v26  ;;  %v2407_v44 = vadd.f32 (!%p2373_p4), %v2710_v35, %v2384_v24  ;;  %v2385_v1 = vld [vmem:[#allocation6 + $0x40] sm:$0xff] (!%p2373_p4)  ;;  %v2409_v62 = vadd.f32 (!%p2373_p4), %v2710_v35, %v2386_v22  ;;  %v2388_v46 = vld [vmem:[#allocation6 + $0x58] sm:$0xff] (!%p2373_p4) }
 0x6a2   : > { %2416 = vst.msk [vmem:[%s3561_s17] sm:$0xff] (!%p2373_p4), %vm823_vm4, %v2400_v41  ;;  %2417 = vst.msk [vmem:[%s3561_s17 + $0x8] sm:$0xff] (!%p2373_p4), %vm823_vm4, %v2401_v17  ;;  %v2406_v27 = vadd.f32 (!%p2373_p4), %v2710_v35, %v2383_v34  ;;  %v2387_v56 = vld [vmem:[#allocation6 + $0x50] sm:$0xff] (!%p2373_p4)  ;;  %v2408_v52 = vadd.f32 (!%p2373_p4), %v2710_v35, %v2385_v1  ;;  %v2389_v40 = vld [vmem:[#allocation6 + $0x60] sm:$0xff] (!%p2373_p4)  ;;  %v2411_v54 = vadd.f32 (!%p2373_p4), %v2710_v35, %v2388_v46 }
 0x6a3   : > { %2418 = vst.msk [vmem:[%s3561_s17 + $0x10] sm:$0xff] (!%p2373_p4), %vm823_vm4, %v2402_v49  ;;  %2419 = vst.msk [vmem:[%s3561_s17 + $0x18] sm:$0xff] (!%p2373_p4), %vm823_vm4, %v2403_v9  ;;  %v2410_v48 = vadd.f32 (!%p2373_p4), %v2710_v35, %v2387_v56  ;;  %v2390_v32 = vld [vmem:[#allocation6 + $0x68] sm:$0xff] (!%p2373_p4)  ;;  %v2412_v4 = vadd.f32 (!%p2373_p4), %v2710_v35, %v2389_v40  ;;  %v2391_v55 = vld [vmem:[#allocation6 + $0x70] sm:$0xff] (!%p2373_p4) }
 0x6a4   : > { %2420 = vst.msk [vmem:[%s3561_s17 + $0x20] sm:$0xff] (!%p2373_p4), %vm823_vm4, %v2404_v15  ;;  %2421 = vst.msk [vmem:[%s3561_s17 + $0x28] sm:$0xff] (!%p2373_p4), %vm823_vm4, %v2405_v43  ;;  %v2413_v11 = vadd.f32 (!%p2373_p4), %v2710_v35, %v2390_v32  ;;  %v2392_v13 = vld [vmem:[#allocation6 + $0x78] sm:$0xff] (!%p2373_p4)  ;;  %v2414_v16 = vadd.f32 (!%p2373_p4), %v2710_v35, %v2391_v55 }
 0x6a5   : > { %2422 = vst.msk [vmem:[%s3561_s17 + $0x30] sm:$0xff] (!%p2373_p4), %vm823_vm4, %v2406_v27  ;;  %2423 = vst.msk [vmem:[%s3561_s17 + $0x38] sm:$0xff] (!%p2373_p4), %vm823_vm4, %v2407_v44  ;;  %v2415_v47 = vadd.f32 (!%p2373_p4), %v2710_v35, %v2392_v13 }
 0x6a6   : > { %2424 = vst.msk [vmem:[%s3561_s17 + $0x40] sm:$0xff] %vm823_vm4, %v2408_v52  ;;  %2425 = vst.msk [vmem:[%s3561_s17 + $0x48] sm:$0xff] %vm823_vm4, %v2409_v62 }
 0x6a7   : > { %2426 = vst.msk [vmem:[%s3561_s17 + $0x50] sm:$0xff] %vm823_vm4, %v2410_v48  ;;  %2427 = vst.msk [vmem:[%s3561_s17 + $0x58] sm:$0xff] %vm823_vm4, %v2411_v54 }
 0x6a8   : > { %2428 = vst.msk [vmem:[%s3561_s17 + $0x60] sm:$0xff] %vm823_vm4, %v2412_v4  ;;  %2429 = vst.msk [vmem:[%s3561_s17 + $0x68] sm:$0xff] %vm823_vm4, %v2413_v11 }
 0x6a9   : > { %2430 = vst.msk [vmem:[%s3561_s17 + $0x70] sm:$0xff] %vm823_vm4, %v2414_v16  ;;  %2431 = vst.msk [vmem:[%s3561_s17 + $0x78] sm:$0xff] %vm823_vm4, %v2415_v47 }
 0x6aa PF: > { %s18_s13 = sadd.s32 1, %s3436_s13   ;;  %s4388_s29 = sld [smem:[#allocation7_spill]] }
 0x6ab   : > { %p15_p5 = scmp.ge.s32.totalorder %s18_s13, 34   ;;  %s4389_s30 = sld [smem:[#allocation8_spill]] }
 0x6ac   : > { %s4390_s25 = sld [smem:[#allocation9_spill]]  ;;  %s4391_s21 = sld [smem:[#allocation10_spill]] }
 0x6ad   : > { %s4392_s11 = sld [smem:[#allocation11_spill]]  ;;  %s4393_s12 = sld [smem:[#allocation12_spill]] }
 0x6ae   : > { %s4394_s27 = smov %s3420_s9  ;;  %s4395_s28 = smov %s3424_s10 }
 0x6af   :  { %17 = sbr.rel (!%p15_p5) target bundleno = 6 (0x6), region = 116 }
 0x6b2   : > { %s4396_s9 = smov %s4390_s25  ;;  %s4397_s10 = smov %s4391_s21 }

</bundles_post_ra>
